<compile_context>
chip_gen: v6e
topology: v6e:2x2x1
jax: 0.10.0
libtpu: 0.0.40
codegen_flags: <defaults>
</compile_context>

<pallas_src>
import functools
import math

import numpy as np
import jax
import jax.numpy as jnp
from jax.experimental import pallas as pl
from jax.experimental.pallas import tpu as pltpu


# ----------------------------- fused kernel -----------------------------

def _dsnn_fused_kernel(xd_ref, sn_ref,
                       hsel_ref, r0_ref, r1_ref, rmat_ref,
                       rsel_ref, csel_ref, gbias_ref,
                       l1w_ref, dmask_ref, fold_ref, l1b_ref,
                       l2w_ref, l2b_ref,
                       fw1_ref, fb1_ref, fw2_ref, fb2_ref,
                       e_ref, *, wn, steps, feat2):
    """Whole DSNN_qt forward for one image (grid axis = batch, 'parallel').

    Spatial shifts (conv taps + zero padding) and the fractional-pool
    candidate picks are matmuls against small static 0/1 matrices, so all
    intermediates stay lane-dense in VMEM for the whole forward.
    """
    f32 = jnp.float32
    xd = xd_ref[...]                                    # (H, W*3)

    # ---- TLayer (both steps): shared per-channel 3x3 conv, product, ch-sum ----
    y0 = None
    y1 = None
    for kh in range(hsel_ref.shape[0]):
        xs = jnp.dot(hsel_ref[kh], xd, preferred_element_type=f32)   # h-shift
        a0 = jnp.dot(xs, r0_ref[kh], preferred_element_type=f32)     # (H, 3*W*n_t)
        a1 = jnp.dot(xs, r1_ref[kh], preferred_element_type=f32)
        y0 = a0 if y0 is None else y0 + a0
        y1 = a1 if y1 is None else y1 + a1
    p = y0 * y1
    # sum over the 3 input channels: three 128-lane-aligned slice adds (VPU)
    t = p[:, 0:wn] + p[:, wn:2 * wn] + p[:, 2 * wn:3 * wn]           # (H, W*n_t)

    # ---- g-conv (both steps, block-diagonal across steps) ----
    conv = None
    for dh in range(hsel_ref.shape[0]):
        ts = jnp.dot(hsel_ref[dh], t, preferred_element_type=f32)
        c = jnp.dot(ts, rmat_ref[dh], preferred_element_type=f32)    # (H, W*n_g)
        conv = c if conv is None else conv + c

    # ---- fractional 2x2 max pool (static regions) + bias + tanh ----
    # tanh(max(conv) + b) == max(tanh(conv + b)) since tanh is monotone and
    # the bias is constant over a pooling window.
    r_a = jnp.dot(rsel_ref[0], conv, preferred_element_type=f32)     # (oh, W*n_g)
    r_b = jnp.dot(rsel_ref[1], conv, preferred_element_type=f32)
    rmax = jnp.maximum(r_a, r_b)
    p_a = jnp.dot(rmax, csel_ref[0], preferred_element_type=f32)     # (oh, ow*n_g)
    p_b = jnp.dot(rmax, csel_ref[1], preferred_element_type=f32)
    pooled = jnp.tanh(jnp.maximum(p_a, p_b) + gbias_ref[...])
    # TODO(synk): Dropout2d is treated as identity (eval-mode semantics).

    # ---- g-head lin1 (+tanh) + lin2, both steps at once ----
    # Contraction over pooled rows done via diagonal-mask + fold matmul
    # (PyTorch (C,H,W) flatten order is absorbed into l1w on the host).
    z = jnp.dot(pooled, l1w_ref[...], preferred_element_type=f32)    # (oh, oh*S*F1)
    zsum = jnp.sum(z * dmask_ref[...], axis=0, keepdims=True)        # (1, oh*S*F1)
    h1 = jnp.dot(zsum, fold_ref[...], preferred_element_type=f32)    # (1, S*F1)
    h1 = jnp.tanh(h1 + l1b_ref[...])
    g_all = jnp.dot(h1, l2w_ref[...], preferred_element_type=f32) + l2b_ref[...]

    # ---- f-mapping recurrence + Sn update + final channel sum ----
    s = sn_ref[0]                                       # (1, f_in)
    for j in range(steps):
        fh = jnp.tanh(jnp.dot(s, fw1_ref[j], preferred_element_type=f32)
                      + fb1_ref[j])
        fn = jnp.dot(fh, fw2_ref[j], preferred_element_type=f32) + fb2_ref[j]
        s = fn * g_all[:, j * feat2:(j + 1) * feat2]
    e_ref[0] = jnp.sum(s, axis=1, keepdims=True)        # E = Sn.sum(1, keepdim)


# ----------------------------- jitted forward -----------------------------

def dsnn_qt_forward(x, sn, packed):
    """DSNN_qt.forward(x, Sn).  x: (B, 3, N, N) NCHW, sn: (B, f_in)."""
    (hsel, r0, r1, rmat, rsel, csel, gbias,
     l1w, dmask, fold, l1b, l2w, l2b, fw1, fb1, fw2, fb2) = packed
    B, cin, H, W = x.shape
    n_t = rmat.shape[1] // W
    steps = fw1.shape[0]
    feat2 = l2b.shape[1] // steps
    f_in = sn.shape[1]

    # the ONLY per-forward XLA glue: channel-last + lane-dense view of x
    xd = jnp.transpose(x, (0, 2, 3, 1)).reshape(B * H, W * cin)
    sn3 = sn.reshape(B, 1, f_in)

    def _const_spec(a):
        nd = a.ndim
        return pl.BlockSpec(a.shape, lambda b, _nd=nd: (0,) * _nd)

    weights = (hsel, r0, r1, rmat, rsel, csel, gbias,
               l1w, dmask, fold, l1b, l2w, l2b, fw1, fb1, fw2, fb2)

    e3 = pl.pallas_call(
        functools.partial(_dsnn_fused_kernel, wn=W * n_t, steps=steps,
                          feat2=feat2),
        out_shape=jax.ShapeDtypeStruct((B, 1, 1), jnp.float32),
        grid=(B,),
        in_specs=[pl.BlockSpec((H, W * cin), lambda b: (b, 0)),
                  pl.BlockSpec((1, 1, f_in), lambda b: (b, 0, 0))]
                 + [_const_spec(w) for w in weights],
        out_specs=pl.BlockSpec((1, 1, 1), lambda b: (b, 0, 0)),
        compiler_params=pltpu.CompilerParams(
            dimension_semantics=("parallel",)),
    )(xd, sn3, *weights)
    return e3.reshape(B, 1)


# --------------------- host-side (one-time) weight packing ---------------------

def _frac_pool_starts(in_size, out_size, kernel=2, u=0.5):
    # TODO(synk): PyTorch FractionalMaxPool2d draws u ~ U(0,1) per forward;
    # we fix u = 0.5 so the pooling regions are deterministic/static.
    alpha = (in_size - kernel) / max(out_size - 1, 1)
    starts = [min(int((i + u) * alpha) - int(u * alpha), in_size - kernel)
              for i in range(out_size - 1)] + [in_size - kernel]
    return np.asarray(starts, dtype=np.int32)


def pack_dsnn_weights(step_params, *, H, W, cin, Ct, kt, Cg, kg, feat1, feat2):
    """Pack all DSNN_qt weights for the fused kernel.  Pure numpy, runs once
    at setup (outside jit) — nothing here is traced per forward."""
    steps = len(step_params)
    assert kt == 3 and kg == 3, "packing below assumes 3x3 kernels (pad=1)"
    assert cin == 3, "DSNN_qt chunks x into exactly 3 channels"
    n_t, n_g = steps * Ct, steps * Cg
    oh = int(math.floor(H * 2.0 / 3.0))
    ow = int(math.floor(W * 2.0 / 3.0))
    sf1 = steps * feat1

    # shared h-shift (zero padded) selector used by both 3x3 convs
    hsel = np.zeros((3, H, H), np.float32)
    for dh in range(3):
        for h in range(H):
            k = h + dh - 1
            if 0 <= k < H:
                hsel[dh, h, k] = 1.0

    # TLayer: w-shift + shared single-channel conv weights, block-diag in (c, w)
    r0 = np.zeros((3, W * cin, cin * W * n_t), np.float32)
    r1 = np.zeros_like(r0)
    for s, sp in enumerate(step_params):
        w0 = np.asarray(sp["T_w0"], np.float32)          # (Ct, 1, 3, 3)
        w1 = np.asarray(sp["T_w1"], np.float32)
        for kh in range(3):
            for kw in range(3):
                for w2 in range(W):
                    w = w2 + kw - 1
                    if not 0 <= w < W:
                        continue
                    for c in range(cin):
                        row = w * cin + c
                        base = c * (W * n_t) + w2 * n_t + s * Ct
                        r0[kh, row, base:base + Ct] = w0[:, 0, kh, kw]
                        r1[kh, row, base:base + Ct] = w1[:, 0, kh, kw]

    # g-conv: w-shift + (Ct -> Cg) channel mixing, block-diag across steps
    rmat = np.zeros((3, W * n_t, W * n_g), np.float32)
    for s, sp in enumerate(step_params):
        cw = np.asarray(sp["g"]["conv_w"], np.float32)   # (Cg, Ct, 3, 3)
        for dh in range(3):
            for dw in range(3):
                for w2 in range(W):
                    w = w2 + dw - 1
                    if not 0 <= w < W:
                        continue
                    rmat[dh,
                         w * n_t + s * Ct:w * n_t + s * Ct + Ct,
                         w2 * n_g + s * Cg:w2 * n_g + s * Cg + Cg] = \
                        cw[:, :, dh, dw].T

    # fractional 2x2 max-pool candidate selectors (static regions)
    hstarts = _frac_pool_starts(H, oh)
    wstarts = _frac_pool_starts(W, ow)
    rsel = np.zeros((2, oh, H), np.float32)
    csel = np.zeros((2, W * n_g, ow * n_g), np.float32)
    for d in range(2):
        for i in range(oh):
            rsel[d, i, hstarts[i] + d] = 1.0
        for j in range(ow):
            for dg in range(n_g):
                csel[d, (wstarts[j] + d) * n_g + dg, j * n_g + dg] = 1.0

    # conv bias tiled over the pooled columns
    gbias = np.zeros((1, ow * n_g), np.float32)
    for s, sp in enumerate(step_params):
        cb = np.asarray(sp["g"]["conv_b"], np.float32)
        for j in range(ow):
            gbias[0, j * n_g + s * Cg:j * n_g + s * Cg + Cg] = cb

    # lin1: PyTorch (C, H, W) flatten order absorbed into the weight;
    # diagonal mask + fold implement the contraction over pooled rows.
    l1w = np.zeros((ow * n_g, oh * sf1), np.float32)
    for s, sp in enumerate(step_params):
        W1 = np.asarray(sp["g"]["lin1_w"], np.float32)   # (feat1, Cg*oh*ow)
        for i in range(oh):
            for j in range(ow):
                for cg in range(Cg):
                    in_idx = cg * oh * ow + i * ow + j
                    col = i * sf1 + s * feat1
                    l1w[j * n_g + s * Cg + cg, col:col + feat1] = W1[:, in_idx]
    dmask = np.zeros((oh, oh * sf1), np.float32)
    fold = np.zeros((oh * sf1, sf1), np.float32)
    eye = np.eye(sf1, dtype=np.float32)
    for i in range(oh):
        dmask[i, i * sf1:(i + 1) * sf1] = 1.0
        fold[i * sf1:(i + 1) * sf1, :] = eye
    l1b = np.concatenate([np.asarray(sp["g"]["lin1_b"], np.float32)
                          for sp in step_params]).reshape(1, sf1)

    # lin2 (block-diagonal across steps)
    l2w = np.zeros((sf1, steps * feat2), np.float32)
    for s, sp in enumerate(step_params):
        W2 = np.asarray(sp["g"]["lin2_w"], np.float32)   # (feat2, feat1)
        l2w[s * feat1:(s + 1) * feat1, s * feat2:(s + 1) * feat2] = W2.T
    l2b = np.concatenate([np.asarray(sp["g"]["lin2_b"], np.float32)
                          for sp in step_params]).reshape(1, steps * feat2)

    # f-mapping (per-step; the recurrence over steps is sequential anyway)
    fw1 = np.stack([np.asarray(sp["f"]["w1"], np.float32).T for sp in step_params])
    fb1 = np.stack([np.asarray(sp["f"]["b1"], np.float32).reshape(1, -1)
                    for sp in step_params])
    fw2 = np.stack([np.asarray(sp["f"]["w2"], np.float32).T for sp in step_params])
    fb2 = np.stack([np.asarray(sp["f"]["b2"], np.float32).reshape(1, -1)
                    for sp in step_params])

    packed_np = (hsel, r0, r1, rmat, rsel, csel, gbias,
                 l1w, dmask, fold, l1b, l2w, l2b, fw1, fb1, fw2, fb2)
    return tuple(jnp.asarray(a) for a in packed_np)


# ----------------------------- setup / driver -----------------------------

def _randn(key, shape, scale=0.1):
    return scale * jax.random.normal(key, shape, dtype=jnp.float32)


if __name__ == "__main__":
    # Small, self-consistent configuration (matches the module's constraints).
    B, N = 2, 16
    sym_out, sym_k = 4, 3                 # symmetrization_out_channels / kernel
    steps = 2                             # stepsAfterInit
    conv1_out, conv_k = 4, 3              # nonlinear conv channels / kernel
    lin_feat1, lin_feat2 = 32, 16         # nonlinear_conv_linear_out_features1/2
    f_in, f_hid, f_out = 16, 32, 16       # no_conv_lin_layer dims (f_out == lin_feat2)
    out_h = out_w = int(math.floor(N * 2.0 / 3.0))   # fractional pool output: 10
    lin1_in = conv1_out * out_h * out_w              # lazy nn.Linear in_features = 400

    keys = iter(jax.random.split(jax.random.PRNGKey(0), 64))
    step_params = []
    for _ in range(steps):
        step_params.append({
            "T_w0": _randn(next(keys), (sym_out, 1, sym_k, sym_k)),
            "T_w1": _randn(next(keys), (sym_out, 1, sym_k, sym_k)),
            "f": {
                "w1": _randn(next(keys), (f_hid, f_in)),     # torch (out, in)
                "b1": _randn(next(keys), (f_hid,)),
                "w2": _randn(next(keys), (f_out, f_hid)),
                "b2": _randn(next(keys), (f_out,)),
            },
            "g": {
                "conv_w": _randn(next(keys), (conv1_out, sym_out, conv_k, conv_k)),
                "conv_b": _randn(next(keys), (conv1_out,)),
                "lin1_w": _randn(next(keys), (lin_feat1, lin1_in)),  # torch (out, in)
                "lin1_b": _randn(next(keys), (lin_feat1,)),
                "lin2_w": _randn(next(keys), (lin_feat2, lin_feat1)),
                "lin2_b": _randn(next(keys), (lin_feat2,)),
            },
        })

    # Hoisted weight packing: host-side numpy, runs ONCE (outside jit).
    packed = pack_dsnn_weights(step_params, H=N, W=N, cin=3, Ct=sym_out,
                               kt=sym_k, Cg=conv1_out, kg=conv_k,
                               feat1=lin_feat1, feat2=lin_feat2)

    kx, ks = jax.random.split(jax.random.PRNGKey(0), 2)
    x = jax.random.normal(kx, (B, 3, N, N), dtype=jnp.float32)
    sn = jax.random.normal(ks, (B, f_in), dtype=jnp.float32)

    fwd = jax.jit(dsnn_qt_forward)
    e = fwd(x, sn, packed)
    jax.block_until_ready(e)
    assert e.shape == (B, 1) and e.dtype == jnp.float32
    assert bool(jnp.all(jnp.isfinite(e)))
    print("KERNEL_OK")
</pallas_src>

<mosaic_0001>
module attributes {stable_mosaic.version = 11 : i64} {
  func.func @_dsnn_fused_kernel(%arg0: i32, %arg1: memref<16x48xf32, #tpu.memory_space<vmem>>, %arg2: memref<1x1x16xf32, #tpu.memory_space<vmem>>, %arg3: memref<3x16x16xf32, #tpu.memory_space<vmem>>, %arg4: memref<3x48x384xf32, #tpu.memory_space<vmem>>, %arg5: memref<3x48x384xf32, #tpu.memory_space<vmem>>, %arg6: memref<3x128x128xf32, #tpu.memory_space<vmem>>, %arg7: memref<2x10x16xf32, #tpu.memory_space<vmem>>, %arg8: memref<2x128x80xf32, #tpu.memory_space<vmem>>, %arg9: memref<1x80xf32, #tpu.memory_space<vmem>>, %arg10: memref<80x640xf32, #tpu.memory_space<vmem>>, %arg11: memref<10x640xf32, #tpu.memory_space<vmem>>, %arg12: memref<640x64xf32, #tpu.memory_space<vmem>>, %arg13: memref<1x64xf32, #tpu.memory_space<vmem>>, %arg14: memref<64x32xf32, #tpu.memory_space<vmem>>, %arg15: memref<1x32xf32, #tpu.memory_space<vmem>>, %arg16: memref<2x16x32xf32, #tpu.memory_space<vmem>>, %arg17: memref<2x1x32xf32, #tpu.memory_space<vmem>>, %arg18: memref<2x32x16xf32, #tpu.memory_space<vmem>>, %arg19: memref<2x1x16xf32, #tpu.memory_space<vmem>>, %arg20: memref<1x1x1xf32, #tpu.memory_space<vmem>>) attributes {dimension_semantics = [#tpu.dimension_semantics<parallel>], iteration_bounds = array<i64: 2>, scalar_prefetch = 0 : i64, scratch_operands = 0 : i64, tpu.core_type = #tpu.core_type<tc>, window_params = [{transform_indices = @transform_0, window_bounds = array<i64: 16, 48>}, {transform_indices = @transform_1, window_bounds = array<i64: 1, 1, 16>}, {pipeline_mode = #tpu.pipeline_mode<synchronous>, transform_indices = @transform_2, window_bounds = array<i64: 3, 16, 16>}, {pipeline_mode = #tpu.pipeline_mode<synchronous>, transform_indices = @transform_3, window_bounds = array<i64: 3, 48, 384>}, {pipeline_mode = #tpu.pipeline_mode<synchronous>, transform_indices = @transform_4, window_bounds = array<i64: 3, 48, 384>}, {pipeline_mode = #tpu.pipeline_mode<synchronous>, transform_indices = @transform_5, window_bounds = array<i64: 3, 128, 128>}, {pipeline_mode = #tpu.pipeline_mode<synchronous>, transform_indices = @transform_6, window_bounds = array<i64: 2, 10, 16>}, {pipeline_mode = #tpu.pipeline_mode<synchronous>, transform_indices = @transform_7, window_bounds = array<i64: 2, 128, 80>}, {pipeline_mode = #tpu.pipeline_mode<synchronous>, transform_indices = @transform_8, window_bounds = array<i64: 1, 80>}, {pipeline_mode = #tpu.pipeline_mode<synchronous>, transform_indices = @transform_9, window_bounds = array<i64: 80, 640>}, {pipeline_mode = #tpu.pipeline_mode<synchronous>, transform_indices = @transform_10, window_bounds = array<i64: 10, 640>}, {pipeline_mode = #tpu.pipeline_mode<synchronous>, transform_indices = @transform_11, window_bounds = array<i64: 640, 64>}, {pipeline_mode = #tpu.pipeline_mode<synchronous>, transform_indices = @transform_12, window_bounds = array<i64: 1, 64>}, {pipeline_mode = #tpu.pipeline_mode<synchronous>, transform_indices = @transform_13, window_bounds = array<i64: 64, 32>}, {pipeline_mode = #tpu.pipeline_mode<synchronous>, transform_indices = @transform_14, window_bounds = array<i64: 1, 32>}, {pipeline_mode = #tpu.pipeline_mode<synchronous>, transform_indices = @transform_15, window_bounds = array<i64: 2, 16, 32>}, {pipeline_mode = #tpu.pipeline_mode<synchronous>, transform_indices = @transform_16, window_bounds = array<i64: 2, 1, 32>}, {pipeline_mode = #tpu.pipeline_mode<synchronous>, transform_indices = @transform_17, window_bounds = array<i64: 2, 32, 16>}, {pipeline_mode = #tpu.pipeline_mode<synchronous>, transform_indices = @transform_18, window_bounds = array<i64: 2, 1, 16>}, {transform_indices = @transform_19, window_bounds = array<i64: 1, 1, 1>}]} {
    %c0 = arith.constant 0 : index
    %c0_0 = arith.constant 0 : index
    %0 = vector.load %arg1[%c0, %c0_0] : memref<16x48xf32, #tpu.memory_space<vmem>>, vector<16x48xf32>
    %c0_1 = arith.constant 0 : index
    %c0_2 = arith.constant 0 : index
    %c0_3 = arith.constant 0 : index
    %1 = vector.load %arg3[%c0_1, %c0_2, %c0_3] : memref<3x16x16xf32, #tpu.memory_space<vmem>>, vector<1x16x16xf32>
    %2 = vector.shape_cast %1 : vector<1x16x16xf32> to vector<16x16xf32>
    %cst = arith.constant dense<0.000000e+00> : vector<16x48xf32>
    %3 = tpu.matmul %2, %0, %cst {dimension_numbers = #tpu.dot_dimension_numbers<[1], [0], [0], [1], [0, 0, 1, 1], [], []>} : vector<16x16xf32>, vector<16x48xf32>, vector<16x48xf32> -> vector<16x48xf32>
    %c0_4 = arith.constant 0 : index
    %c0_5 = arith.constant 0 : index
    %c0_6 = arith.constant 0 : index
    %4 = vector.load %arg4[%c0_4, %c0_5, %c0_6] : memref<3x48x384xf32, #tpu.memory_space<vmem>>, vector<1x48x384xf32>
    %5 = vector.shape_cast %4 : vector<1x48x384xf32> to vector<48x384xf32>
    %cst_7 = arith.constant dense<0.000000e+00> : vector<16x384xf32>
    %6 = tpu.matmul %3, %5, %cst_7 {dimension_numbers = #tpu.dot_dimension_numbers<[1], [0], [0], [1], [0, 0, 1, 1], [], []>} : vector<16x48xf32>, vector<48x384xf32>, vector<16x384xf32> -> vector<16x384xf32>
    %c0_8 = arith.constant 0 : index
    %c0_9 = arith.constant 0 : index
    %c0_10 = arith.constant 0 : index
    %7 = vector.load %arg5[%c0_8, %c0_9, %c0_10] : memref<3x48x384xf32, #tpu.memory_space<vmem>>, vector<1x48x384xf32>
    %8 = vector.shape_cast %7 : vector<1x48x384xf32> to vector<48x384xf32>
    %cst_11 = arith.constant dense<0.000000e+00> : vector<16x384xf32>
    %9 = tpu.matmul %3, %8, %cst_11 {dimension_numbers = #tpu.dot_dimension_numbers<[1], [0], [0], [1], [0, 0, 1, 1], [], []>} : vector<16x48xf32>, vector<48x384xf32>, vector<16x384xf32> -> vector<16x384xf32>
    %c1 = arith.constant 1 : index
    %c0_12 = arith.constant 0 : index
    %c0_13 = arith.constant 0 : index
    %10 = vector.load %arg3[%c1, %c0_12, %c0_13] : memref<3x16x16xf32, #tpu.memory_space<vmem>>, vector<1x16x16xf32>
    %11 = vector.shape_cast %10 : vector<1x16x16xf32> to vector<16x16xf32>
    %cst_14 = arith.constant dense<0.000000e+00> : vector<16x48xf32>
    %12 = tpu.matmul %11, %0, %cst_14 {dimension_numbers = #tpu.dot_dimension_numbers<[1], [0], [0], [1], [0, 0, 1, 1], [], []>} : vector<16x16xf32>, vector<16x48xf32>, vector<16x48xf32> -> vector<16x48xf32>
    %c1_15 = arith.constant 1 : index
    %c0_16 = arith.constant 0 : index
    %c0_17 = arith.constant 0 : index
    %13 = vector.load %arg4[%c1_15, %c0_16, %c0_17] : memref<3x48x384xf32, #tpu.memory_space<vmem>>, vector<1x48x384xf32>
    %14 = vector.shape_cast %13 : vector<1x48x384xf32> to vector<48x384xf32>
    %cst_18 = arith.constant dense<0.000000e+00> : vector<16x384xf32>
    %15 = tpu.matmul %12, %14, %cst_18 {dimension_numbers = #tpu.dot_dimension_numbers<[1], [0], [0], [1], [0, 0, 1, 1], [], []>} : vector<16x48xf32>, vector<48x384xf32>, vector<16x384xf32> -> vector<16x384xf32>
    %c1_19 = arith.constant 1 : index
    %c0_20 = arith.constant 0 : index
    %c0_21 = arith.constant 0 : index
    %16 = vector.load %arg5[%c1_19, %c0_20, %c0_21] : memref<3x48x384xf32, #tpu.memory_space<vmem>>, vector<1x48x384xf32>
    %17 = vector.shape_cast %16 : vector<1x48x384xf32> to vector<48x384xf32>
    %cst_22 = arith.constant dense<0.000000e+00> : vector<16x384xf32>
    %18 = tpu.matmul %12, %17, %cst_22 {dimension_numbers = #tpu.dot_dimension_numbers<[1], [0], [0], [1], [0, 0, 1, 1], [], []>} : vector<16x48xf32>, vector<48x384xf32>, vector<16x384xf32> -> vector<16x384xf32>
    %19 = arith.addf %6, %15 : vector<16x384xf32>
    %20 = arith.addf %9, %18 : vector<16x384xf32>
    %c2 = arith.constant 2 : index
    %c0_23 = arith.constant 0 : index
    %c0_24 = arith.constant 0 : index
    %21 = vector.load %arg3[%c2, %c0_23, %c0_24] : memref<3x16x16xf32, #tpu.memory_space<vmem>>, vector<1x16x16xf32>
    %22 = vector.shape_cast %21 : vector<1x16x16xf32> to vector<16x16xf32>
    %cst_25 = arith.constant dense<0.000000e+00> : vector<16x48xf32>
    %23 = tpu.matmul %22, %0, %cst_25 {dimension_numbers = #tpu.dot_dimension_numbers<[1], [0], [0], [1], [0, 0, 1, 1], [], []>} : vector<16x16xf32>, vector<16x48xf32>, vector<16x48xf32> -> vector<16x48xf32>
    %c2_26 = arith.constant 2 : index
    %c0_27 = arith.constant 0 : index
    %c0_28 = arith.constant 0 : index
    %24 = vector.load %arg4[%c2_26, %c0_27, %c0_28] : memref<3x48x384xf32, #tpu.memory_space<vmem>>, vector<1x48x384xf32>
    %25 = vector.shape_cast %24 : vector<1x48x384xf32> to vector<48x384xf32>
    %cst_29 = arith.constant dense<0.000000e+00> : vector<16x384xf32>
    %26 = tpu.matmul %23, %25, %cst_29 {dimension_numbers = #tpu.dot_dimension_numbers<[1], [0], [0], [1], [0, 0, 1, 1], [], []>} : vector<16x48xf32>, vector<48x384xf32>, vector<16x384xf32> -> vector<16x384xf32>
    %c2_30 = arith.constant 2 : index
    %c0_31 = arith.constant 0 : index
    %c0_32 = arith.constant 0 : index
    %27 = vector.load %arg5[%c2_30, %c0_31, %c0_32] : memref<3x48x384xf32, #tpu.memory_space<vmem>>, vector<1x48x384xf32>
    %28 = vector.shape_cast %27 : vector<1x48x384xf32> to vector<48x384xf32>
    %cst_33 = arith.constant dense<0.000000e+00> : vector<16x384xf32>
    %29 = tpu.matmul %23, %28, %cst_33 {dimension_numbers = #tpu.dot_dimension_numbers<[1], [0], [0], [1], [0, 0, 1, 1], [], []>} : vector<16x48xf32>, vector<48x384xf32>, vector<16x384xf32> -> vector<16x384xf32>
    %30 = arith.addf %19, %26 : vector<16x384xf32>
    %31 = arith.addf %20, %29 : vector<16x384xf32>
    %32 = arith.mulf %30, %31 : vector<16x384xf32>
    %33 = vector.extract_strided_slice %32 {offsets = [0, 0], sizes = [16, 128], strides = [1, 1]} : vector<16x384xf32> to vector<16x128xf32>
    %34 = vector.extract_strided_slice %32 {offsets = [0, 128], sizes = [16, 128], strides = [1, 1]} : vector<16x384xf32> to vector<16x128xf32>
    %35 = arith.addf %33, %34 : vector<16x128xf32>
    %36 = vector.extract_strided_slice %32 {offsets = [0, 256], sizes = [16, 128], strides = [1, 1]} : vector<16x384xf32> to vector<16x128xf32>
    %37 = arith.addf %35, %36 : vector<16x128xf32>
    %c0_34 = arith.constant 0 : index
    %c0_35 = arith.constant 0 : index
    %c0_36 = arith.constant 0 : index
    %38 = vector.load %arg3[%c0_34, %c0_35, %c0_36] : memref<3x16x16xf32, #tpu.memory_space<vmem>>, vector<1x16x16xf32>
    %39 = vector.shape_cast %38 : vector<1x16x16xf32> to vector<16x16xf32>
    %cst_37 = arith.constant dense<0.000000e+00> : vector<16x128xf32>
    %40 = tpu.matmul %39, %37, %cst_37 {dimension_numbers = #tpu.dot_dimension_numbers<[1], [0], [0], [1], [0, 0, 1, 1], [], []>} : vector<16x16xf32>, vector<16x128xf32>, vector<16x128xf32> -> vector<16x128xf32>
    %c0_38 = arith.constant 0 : index
    %c0_39 = arith.constant 0 : index
    %c0_40 = arith.constant 0 : index
    %41 = vector.load %arg6[%c0_38, %c0_39, %c0_40] : memref<3x128x128xf32, #tpu.memory_space<vmem>>, vector<1x128x128xf32>
    %42 = vector.shape_cast %41 : vector<1x128x128xf32> to vector<128x128xf32>
    %cst_41 = arith.constant dense<0.000000e+00> : vector<16x128xf32>
    %43 = tpu.matmul %40, %42, %cst_41 {dimension_numbers = #tpu.dot_dimension_numbers<[1], [0], [0], [1], [0, 0, 1, 1], [], []>} : vector<16x128xf32>, vector<128x128xf32>, vector<16x128xf32> -> vector<16x128xf32>
    %c1_42 = arith.constant 1 : index
    %c0_43 = arith.constant 0 : index
    %c0_44 = arith.constant 0 : index
    %44 = vector.load %arg3[%c1_42, %c0_43, %c0_44] : memref<3x16x16xf32, #tpu.memory_space<vmem>>, vector<1x16x16xf32>
    %45 = vector.shape_cast %44 : vector<1x16x16xf32> to vector<16x16xf32>
    %cst_45 = arith.constant dense<0.000000e+00> : vector<16x128xf32>
    %46 = tpu.matmul %45, %37, %cst_45 {dimension_numbers = #tpu.dot_dimension_numbers<[1], [0], [0], [1], [0, 0, 1, 1], [], []>} : vector<16x16xf32>, vector<16x128xf32>, vector<16x128xf32> -> vector<16x128xf32>
    %c1_46 = arith.constant 1 : index
    %c0_47 = arith.constant 0 : index
    %c0_48 = arith.constant 0 : index
    %47 = vector.load %arg6[%c1_46, %c0_47, %c0_48] : memref<3x128x128xf32, #tpu.memory_space<vmem>>, vector<1x128x128xf32>
    %48 = vector.shape_cast %47 : vector<1x128x128xf32> to vector<128x128xf32>
    %cst_49 = arith.constant dense<0.000000e+00> : vector<16x128xf32>
    %49 = tpu.matmul %46, %48, %cst_49 {dimension_numbers = #tpu.dot_dimension_numbers<[1], [0], [0], [1], [0, 0, 1, 1], [], []>} : vector<16x128xf32>, vector<128x128xf32>, vector<16x128xf32> -> vector<16x128xf32>
    %50 = arith.addf %43, %49 : vector<16x128xf32>
    %c2_50 = arith.constant 2 : index
    %c0_51 = arith.constant 0 : index
    %c0_52 = arith.constant 0 : index
    %51 = vector.load %arg3[%c2_50, %c0_51, %c0_52] : memref<3x16x16xf32, #tpu.memory_space<vmem>>, vector<1x16x16xf32>
    %52 = vector.shape_cast %51 : vector<1x16x16xf32> to vector<16x16xf32>
    %cst_53 = arith.constant dense<0.000000e+00> : vector<16x128xf32>
    %53 = tpu.matmul %52, %37, %cst_53 {dimension_numbers = #tpu.dot_dimension_numbers<[1], [0], [0], [1], [0, 0, 1, 1], [], []>} : vector<16x16xf32>, vector<16x128xf32>, vector<16x128xf32> -> vector<16x128xf32>
    %c2_54 = arith.constant 2 : index
    %c0_55 = arith.constant 0 : index
    %c0_56 = arith.constant 0 : index
    %54 = vector.load %arg6[%c2_54, %c0_55, %c0_56] : memref<3x128x128xf32, #tpu.memory_space<vmem>>, vector<1x128x128xf32>
    %55 = vector.shape_cast %54 : vector<1x128x128xf32> to vector<128x128xf32>
    %cst_57 = arith.constant dense<0.000000e+00> : vector<16x128xf32>
    %56 = tpu.matmul %53, %55, %cst_57 {dimension_numbers = #tpu.dot_dimension_numbers<[1], [0], [0], [1], [0, 0, 1, 1], [], []>} : vector<16x128xf32>, vector<128x128xf32>, vector<16x128xf32> -> vector<16x128xf32>
    %57 = arith.addf %50, %56 : vector<16x128xf32>
    %c0_58 = arith.constant 0 : index
    %c0_59 = arith.constant 0 : index
    %c0_60 = arith.constant 0 : index
    %58 = vector.load %arg7[%c0_58, %c0_59, %c0_60] : memref<2x10x16xf32, #tpu.memory_space<vmem>>, vector<1x10x16xf32>
    %59 = vector.shape_cast %58 : vector<1x10x16xf32> to vector<10x16xf32>
    %cst_61 = arith.constant dense<0.000000e+00> : vector<10x128xf32>
    %60 = tpu.matmul %59, %57, %cst_61 {dimension_numbers = #tpu.dot_dimension_numbers<[1], [0], [0], [1], [0, 0, 1, 1], [], []>} : vector<10x16xf32>, vector<16x128xf32>, vector<10x128xf32> -> vector<10x128xf32>
    %c1_62 = arith.constant 1 : index
    %c0_63 = arith.constant 0 : index
    %c0_64 = arith.constant 0 : index
    %61 = vector.load %arg7[%c1_62, %c0_63, %c0_64] : memref<2x10x16xf32, #tpu.memory_space<vmem>>, vector<1x10x16xf32>
    %62 = vector.shape_cast %61 : vector<1x10x16xf32> to vector<10x16xf32>
    %cst_65 = arith.constant dense<0.000000e+00> : vector<10x128xf32>
    %63 = tpu.matmul %62, %57, %cst_65 {dimension_numbers = #tpu.dot_dimension_numbers<[1], [0], [0], [1], [0, 0, 1, 1], [], []>} : vector<10x16xf32>, vector<16x128xf32>, vector<10x128xf32> -> vector<10x128xf32>
    %64 = arith.maximumf %60, %63 : vector<10x128xf32>
    %c0_66 = arith.constant 0 : index
    %c0_67 = arith.constant 0 : index
    %c0_68 = arith.constant 0 : index
    %65 = vector.load %arg8[%c0_66, %c0_67, %c0_68] : memref<2x128x80xf32, #tpu.memory_space<vmem>>, vector<1x128x80xf32>
    %66 = vector.shape_cast %65 : vector<1x128x80xf32> to vector<128x80xf32>
    %cst_69 = arith.constant dense<0.000000e+00> : vector<10x80xf32>
    %67 = tpu.matmul %64, %66, %cst_69 {dimension_numbers = #tpu.dot_dimension_numbers<[1], [0], [0], [1], [0, 0, 1, 1], [], []>} : vector<10x128xf32>, vector<128x80xf32>, vector<10x80xf32> -> vector<10x80xf32>
    %c1_70 = arith.constant 1 : index
    %c0_71 = arith.constant 0 : index
    %c0_72 = arith.constant 0 : index
    %68 = vector.load %arg8[%c1_70, %c0_71, %c0_72] : memref<2x128x80xf32, #tpu.memory_space<vmem>>, vector<1x128x80xf32>
    %69 = vector.shape_cast %68 : vector<1x128x80xf32> to vector<128x80xf32>
    %cst_73 = arith.constant dense<0.000000e+00> : vector<10x80xf32>
    %70 = tpu.matmul %64, %69, %cst_73 {dimension_numbers = #tpu.dot_dimension_numbers<[1], [0], [0], [1], [0, 0, 1, 1], [], []>} : vector<10x128xf32>, vector<128x80xf32>, vector<10x80xf32> -> vector<10x80xf32>
    %71 = arith.maximumf %67, %70 : vector<10x80xf32>
    %c0_74 = arith.constant 0 : index
    %c0_75 = arith.constant 0 : index
    %72 = vector.load %arg9[%c0_74, %c0_75] : memref<1x80xf32, #tpu.memory_space<vmem>>, vector<1x80xf32>
    %73 = vector.broadcast %72 : vector<1x80xf32> to vector<10x80xf32>
    %74 = arith.addf %71, %73 : vector<10x80xf32>
    %75 = math.tanh %74 : vector<10x80xf32>
    %c0_76 = arith.constant 0 : index
    %c0_77 = arith.constant 0 : index
    %76 = vector.load %arg10[%c0_76, %c0_77] : memref<80x640xf32, #tpu.memory_space<vmem>>, vector<80x640xf32>
    %cst_78 = arith.constant dense<0.000000e+00> : vector<10x640xf32>
    %77 = tpu.matmul %75, %76, %cst_78 {dimension_numbers = #tpu.dot_dimension_numbers<[1], [0], [0], [1], [0, 0, 1, 1], [], []>} : vector<10x80xf32>, vector<80x640xf32>, vector<10x640xf32> -> vector<10x640xf32>
    %c0_79 = arith.constant 0 : index
    %c0_80 = arith.constant 0 : index
    %78 = vector.load %arg11[%c0_79, %c0_80] : memref<10x640xf32, #tpu.memory_space<vmem>>, vector<10x640xf32>
    %79 = arith.mulf %77, %78 : vector<10x640xf32>
    %cst_81 = arith.constant dense<0.000000e+00> : vector<640xf32>
    %80 = vector.multi_reduction <add>, %79, %cst_81 [0] : vector<10x640xf32> to vector<640xf32>
    %81 = vector.shape_cast %80 : vector<640xf32> to vector<1x640xf32>
    %c0_82 = arith.constant 0 : index
    %c0_83 = arith.constant 0 : index
    %82 = vector.load %arg12[%c0_82, %c0_83] : memref<640x64xf32, #tpu.memory_space<vmem>>, vector<640x64xf32>
    %cst_84 = arith.constant dense<0.000000e+00> : vector<1x64xf32>
    %83 = tpu.matmul %81, %82, %cst_84 {dimension_numbers = #tpu.dot_dimension_numbers<[1], [0], [0], [1], [0, 0, 1, 1], [], []>} : vector<1x640xf32>, vector<640x64xf32>, vector<1x64xf32> -> vector<1x64xf32>
    %c0_85 = arith.constant 0 : index
    %c0_86 = arith.constant 0 : index
    %84 = vector.load %arg13[%c0_85, %c0_86] : memref<1x64xf32, #tpu.memory_space<vmem>>, vector<1x64xf32>
    %85 = arith.addf %83, %84 : vector<1x64xf32>
    %86 = math.tanh %85 : vector<1x64xf32>
    %c0_87 = arith.constant 0 : index
    %c0_88 = arith.constant 0 : index
    %87 = vector.load %arg14[%c0_87, %c0_88] : memref<64x32xf32, #tpu.memory_space<vmem>>, vector<64x32xf32>
    %cst_89 = arith.constant dense<0.000000e+00> : vector<1x32xf32>
    %88 = tpu.matmul %86, %87, %cst_89 {dimension_numbers = #tpu.dot_dimension_numbers<[1], [0], [0], [1], [0, 0, 1, 1], [], []>} : vector<1x64xf32>, vector<64x32xf32>, vector<1x32xf32> -> vector<1x32xf32>
    %c0_90 = arith.constant 0 : index
    %c0_91 = arith.constant 0 : index
    %89 = vector.load %arg15[%c0_90, %c0_91] : memref<1x32xf32, #tpu.memory_space<vmem>>, vector<1x32xf32>
    %90 = arith.addf %88, %89 : vector<1x32xf32>
    %c0_92 = arith.constant 0 : index
    %c0_93 = arith.constant 0 : index
    %c0_94 = arith.constant 0 : index
    %91 = vector.load %arg2[%c0_92, %c0_93, %c0_94] : memref<1x1x16xf32, #tpu.memory_space<vmem>>, vector<1x1x16xf32>
    %92 = vector.shape_cast %91 : vector<1x1x16xf32> to vector<1x16xf32>
    %c0_95 = arith.constant 0 : index
    %c0_96 = arith.constant 0 : index
    %c0_97 = arith.constant 0 : index
    %93 = vector.load %arg16[%c0_95, %c0_96, %c0_97] : memref<2x16x32xf32, #tpu.memory_space<vmem>>, vector<1x16x32xf32>
    %94 = vector.shape_cast %93 : vector<1x16x32xf32> to vector<16x32xf32>
    %cst_98 = arith.constant dense<0.000000e+00> : vector<1x32xf32>
    %95 = tpu.matmul %92, %94, %cst_98 {dimension_numbers = #tpu.dot_dimension_numbers<[1], [0], [0], [1], [0, 0, 1, 1], [], []>} : vector<1x16xf32>, vector<16x32xf32>, vector<1x32xf32> -> vector<1x32xf32>
    %c0_99 = arith.constant 0 : index
    %c0_100 = arith.constant 0 : index
    %c0_101 = arith.constant 0 : index
    %96 = vector.load %arg17[%c0_99, %c0_100, %c0_101] : memref<2x1x32xf32, #tpu.memory_space<vmem>>, vector<1x1x32xf32>
    %97 = vector.shape_cast %96 : vector<1x1x32xf32> to vector<1x32xf32>
    %98 = arith.addf %95, %97 : vector<1x32xf32>
    %99 = math.tanh %98 : vector<1x32xf32>
    %c0_102 = arith.constant 0 : index
    %c0_103 = arith.constant 0 : index
    %c0_104 = arith.constant 0 : index
    %100 = vector.load %arg18[%c0_102, %c0_103, %c0_104] : memref<2x32x16xf32, #tpu.memory_space<vmem>>, vector<1x32x16xf32>
    %101 = vector.shape_cast %100 : vector<1x32x16xf32> to vector<32x16xf32>
    %cst_105 = arith.constant dense<0.000000e+00> : vector<1x16xf32>
    %102 = tpu.matmul %99, %101, %cst_105 {dimension_numbers = #tpu.dot_dimension_numbers<[1], [0], [0], [1], [0, 0, 1, 1], [], []>} : vector<1x32xf32>, vector<32x16xf32>, vector<1x16xf32> -> vector<1x16xf32>
    %c0_106 = arith.constant 0 : index
    %c0_107 = arith.constant 0 : index
    %c0_108 = arith.constant 0 : index
    %103 = vector.load %arg19[%c0_106, %c0_107, %c0_108] : memref<2x1x16xf32, #tpu.memory_space<vmem>>, vector<1x1x16xf32>
    %104 = vector.shape_cast %103 : vector<1x1x16xf32> to vector<1x16xf32>
    %105 = arith.addf %102, %104 : vector<1x16xf32>
    %106 = vector.extract_strided_slice %90 {offsets = [0, 0], sizes = [1, 16], strides = [1, 1]} : vector<1x32xf32> to vector<1x16xf32>
    %107 = arith.mulf %105, %106 : vector<1x16xf32>
    %c1_109 = arith.constant 1 : index
    %c0_110 = arith.constant 0 : index
    %c0_111 = arith.constant 0 : index
    %108 = vector.load %arg16[%c1_109, %c0_110, %c0_111] : memref<2x16x32xf32, #tpu.memory_space<vmem>>, vector<1x16x32xf32>
    %109 = vector.shape_cast %108 : vector<1x16x32xf32> to vector<16x32xf32>
    %cst_112 = arith.constant dense<0.000000e+00> : vector<1x32xf32>
    %110 = tpu.matmul %107, %109, %cst_112 {dimension_numbers = #tpu.dot_dimension_numbers<[1], [0], [0], [1], [0, 0, 1, 1], [], []>} : vector<1x16xf32>, vector<16x32xf32>, vector<1x32xf32> -> vector<1x32xf32>
    %c1_113 = arith.constant 1 : index
    %c0_114 = arith.constant 0 : index
    %c0_115 = arith.constant 0 : index
    %111 = vector.load %arg17[%c1_113, %c0_114, %c0_115] : memref<2x1x32xf32, #tpu.memory_space<vmem>>, vector<1x1x32xf32>
    %112 = vector.shape_cast %111 : vector<1x1x32xf32> to vector<1x32xf32>
    %113 = arith.addf %110, %112 : vector<1x32xf32>
    %114 = math.tanh %113 : vector<1x32xf32>
    %c1_116 = arith.constant 1 : index
    %c0_117 = arith.constant 0 : index
    %c0_118 = arith.constant 0 : index
    %115 = vector.load %arg18[%c1_116, %c0_117, %c0_118] : memref<2x32x16xf32, #tpu.memory_space<vmem>>, vector<1x32x16xf32>
    %116 = vector.shape_cast %115 : vector<1x32x16xf32> to vector<32x16xf32>
    %cst_119 = arith.constant dense<0.000000e+00> : vector<1x16xf32>
    %117 = tpu.matmul %114, %116, %cst_119 {dimension_numbers = #tpu.dot_dimension_numbers<[1], [0], [0], [1], [0, 0, 1, 1], [], []>} : vector<1x32xf32>, vector<32x16xf32>, vector<1x16xf32> -> vector<1x16xf32>
    %c1_120 = arith.constant 1 : index
    %c0_121 = arith.constant 0 : index
    %c0_122 = arith.constant 0 : index
    %118 = vector.load %arg19[%c1_120, %c0_121, %c0_122] : memref<2x1x16xf32, #tpu.memory_space<vmem>>, vector<1x1x16xf32>
    %119 = vector.shape_cast %118 : vector<1x1x16xf32> to vector<1x16xf32>
    %120 = arith.addf %117, %119 : vector<1x16xf32>
    %121 = vector.extract_strided_slice %90 {offsets = [0, 16], sizes = [1, 16], strides = [1, 1]} : vector<1x32xf32> to vector<1x16xf32>
    %122 = arith.mulf %120, %121 : vector<1x16xf32>
    %cst_123 = arith.constant dense<0.000000e+00> : vector<1xf32>
    %123 = vector.multi_reduction <add>, %122, %cst_123 [1] : vector<1x16xf32> to vector<1xf32>
    %124 = vector.shape_cast %123 : vector<1xf32> to vector<1x1xf32>
    %c0_124 = arith.constant 0 : index
    %c0_125 = arith.constant 0 : index
    %c0_126 = arith.constant 0 : index
    %125 = vector.load %arg20[%c0_124, %c0_125, %c0_126] : memref<1x1x1xf32, #tpu.memory_space<vmem>>, vector<1x1x1xf32>
    %126 = vector.shape_cast %125 : vector<1x1x1xf32> to vector<1x1xf32>
    %127 = vector.shape_cast %124 : vector<1x1xf32> to vector<1x1x1xf32>
    tpu.vector_store %arg20[%c0_124, %c0_125, %c0_126], %127 {strides = array<i32>} : memref<1x1x1xf32, #tpu.memory_space<vmem>>, vector<1x1x1xf32>,
    return
  }
  func.func @transform_0(%arg0: i32) -> (i32, i32) {
    %c0_i32 = arith.constant 0 : i32
    %c0_i32_0 = arith.constant 0 : i32
    return %arg0, %c0_i32 : i32, i32
  }
  func.func @transform_1(%arg0: i32) -> (i32, i32, i32) {
    %c0_i32 = arith.constant 0 : i32
    %c0_i32_0 = arith.constant 0 : i32
    %c0_i32_1 = arith.constant 0 : i32
    return %arg0, %c0_i32, %c0_i32_0 : i32, i32, i32
  }
  func.func @transform_2(%arg0: i32) -> (i32, i32, i32) {
    %c0_i32 = arith.constant 0 : i32
    %c0_i32_0 = arith.constant 0 : i32
    %c0_i32_1 = arith.constant 0 : i32
    %c0_i32_2 = arith.constant 0 : i32
    return %c0_i32, %c0_i32_0, %c0_i32_1 : i32, i32, i32
  }
  func.func @transform_3(%arg0: i32) -> (i32, i32, i32) {
    %c0_i32 = arith.constant 0 : i32
    %c0_i32_0 = arith.constant 0 : i32
    %c0_i32_1 = arith.constant 0 : i32
    %c0_i32_2 = arith.constant 0 : i32
    return %c0_i32, %c0_i32_0, %c0_i32_1 : i32, i32, i32
  }
  func.func @transform_4(%arg0: i32) -> (i32, i32, i32) {
    %c0_i32 = arith.constant 0 : i32
    %c0_i32_0 = arith.constant 0 : i32
    %c0_i32_1 = arith.constant 0 : i32
    %c0_i32_2 = arith.constant 0 : i32
    return %c0_i32, %c0_i32_0, %c0_i32_1 : i32, i32, i32
  }
  func.func @transform_5(%arg0: i32) -> (i32, i32, i32) {
    %c0_i32 = arith.constant 0 : i32
    %c0_i32_0 = arith.constant 0 : i32
    %c0_i32_1 = arith.constant 0 : i32
    %c0_i32_2 = arith.constant 0 : i32
    return %c0_i32, %c0_i32_0, %c0_i32_1 : i32, i32, i32
  }
  func.func @transform_6(%arg0: i32) -> (i32, i32, i32) {
    %c0_i32 = arith.constant 0 : i32
    %c0_i32_0 = arith.constant 0 : i32
    %c0_i32_1 = arith.constant 0 : i32
    %c0_i32_2 = arith.constant 0 : i32
    return %c0_i32, %c0_i32_0, %c0_i32_1 : i32, i32, i32
  }
  func.func @transform_7(%arg0: i32) -> (i32, i32, i32) {
    %c0_i32 = arith.constant 0 : i32
    %c0_i32_0 = arith.constant 0 : i32
    %c0_i32_1 = arith.constant 0 : i32
    %c0_i32_2 = arith.constant 0 : i32
    return %c0_i32, %c0_i32_0, %c0_i32_1 : i32, i32, i32
  }
  func.func @transform_8(%arg0: i32) -> (i32, i32) {
    %c0_i32 = arith.constant 0 : i32
    %c0_i32_0 = arith.constant 0 : i32
    %c0_i32_1 = arith.constant 0 : i32
    return %c0_i32, %c0_i32_0 : i32, i32
  }
  func.func @transform_9(%arg0: i32) -> (i32, i32) {
    %c0_i32 = arith.constant 0 : i32
    %c0_i32_0 = arith.constant 0 : i32
    %c0_i32_1 = arith.constant 0 : i32
    return %c0_i32, %c0_i32_0 : i32, i32
  }
  func.func @transform_10(%arg0: i32) -> (i32, i32) {
    %c0_i32 = arith.constant 0 : i32
    %c0_i32_0 = arith.constant 0 : i32
    %c0_i32_1 = arith.constant 0 : i32
    return %c0_i32, %c0_i32_0 : i32, i32
  }
  func.func @transform_11(%arg0: i32) -> (i32, i32) {
    %c0_i32 = arith.constant 0 : i32
    %c0_i32_0 = arith.constant 0 : i32
    %c0_i32_1 = arith.constant 0 : i32
    return %c0_i32, %c0_i32_0 : i32, i32
  }
  func.func @transform_12(%arg0: i32) -> (i32, i32) {
    %c0_i32 = arith.constant 0 : i32
    %c0_i32_0 = arith.constant 0 : i32
    %c0_i32_1 = arith.constant 0 : i32
    return %c0_i32, %c0_i32_0 : i32, i32
  }
  func.func @transform_13(%arg0: i32) -> (i32, i32) {
    %c0_i32 = arith.constant 0 : i32
    %c0_i32_0 = arith.constant 0 : i32
    %c0_i32_1 = arith.constant 0 : i32
    return %c0_i32, %c0_i32_0 : i32, i32
  }
  func.func @transform_14(%arg0: i32) -> (i32, i32) {
    %c0_i32 = arith.constant 0 : i32
    %c0_i32_0 = arith.constant 0 : i32
    %c0_i32_1 = arith.constant 0 : i32
    return %c0_i32, %c0_i32_0 : i32, i32
  }
  func.func @transform_15(%arg0: i32) -> (i32, i32, i32) {
    %c0_i32 = arith.constant 0 : i32
    %c0_i32_0 = arith.constant 0 : i32
    %c0_i32_1 = arith.constant 0 : i32
    %c0_i32_2 = arith.constant 0 : i32
    return %c0_i32, %c0_i32_0, %c0_i32_1 : i32, i32, i32
  }
  func.func @transform_16(%arg0: i32) -> (i32, i32, i32) {
    %c0_i32 = arith.constant 0 : i32
    %c0_i32_0 = arith.constant 0 : i32
    %c0_i32_1 = arith.constant 0 : i32
    %c0_i32_2 = arith.constant 0 : i32
    return %c0_i32, %c0_i32_0, %c0_i32_1 : i32, i32, i32
  }
  func.func @transform_17(%arg0: i32) -> (i32, i32, i32) {
    %c0_i32 = arith.constant 0 : i32
    %c0_i32_0 = arith.constant 0 : i32
    %c0_i32_1 = arith.constant 0 : i32
    %c0_i32_2 = arith.constant 0 : i32
    return %c0_i32, %c0_i32_0, %c0_i32_1 : i32, i32, i32
  }
  func.func @transform_18(%arg0: i32) -> (i32, i32, i32) {
    %c0_i32 = arith.constant 0 : i32
    %c0_i32_0 = arith.constant 0 : i32
    %c0_i32_1 = arith.constant 0 : i32
    %c0_i32_2 = arith.constant 0 : i32
    return %c0_i32, %c0_i32_0, %c0_i32_1 : i32, i32, i32
  }
  func.func @transform_19(%arg0: i32) -> (i32, i32, i32) {
    %c0_i32 = arith.constant 0 : i32
    %c0_i32_0 = arith.constant 0 : i32
    %c0_i32_1 = arith.constant 0 : i32
    return %arg0, %c0_i32, %c0_i32_0 : i32, i32, i32
  }
}

</mosaic_0001>

<bundles_post_ra>
// kernel: dsnn_qt_forward.1
= control target key start
LH: loop header
LB: loop body
LE: loop exit
PB: predicated region body
PF: predicated region fallthrough
CT: control target
= control target key end

     0   :  { %s6439_s0 = inlined_call_operand.vmem [shape: f32[32,48], index: 0, kind: input, shape index: {}]   ;;  %s6440_s1 = inlined_call_operand.vmem [shape: f32[2,1,16], index: 1, kind: input, shape index: {}]   ;;  %s6441_s2 = inlined_call_operand.hbm [shape: f32[3,16,16], index: 2, kind: input, shape index: {}]   ;;  %s6442_s3 = inlined_call_operand.vmem [shape: f32[3,48,384], index: 3, kind: input, shape index: {}]   ;;  %s6443_s4 = inlined_call_operand.vmem [shape: f32[3,48,384], index: 4, kind: input, shape index: {}]   ;;  %s6444_s5 = inlined_call_operand.vmem [shape: f32[3,128,128], index: 5, kind: input, shape index: {}]   ;;  %s6445_s6 = inlined_call_operand.vmem [shape: f32[2,10,16], index: 6, kind: input, shape index: {}]   ;;  %s6446_s7 = inlined_call_operand.vmem [shape: f32[2,128,80], index: 7, kind: input, shape index: {}]   ;;  %s6447_s8 = inlined_call_operand.vmem [shape: f32[1,80], index: 8, kind: input, shape index: {}]   ;;  %s6448_s9 = inlined_call_operand.vmem [shape: f32[80,640], index: 9, kind: input, shape index: {}]   ;;  %s6449_s10 = inlined_call_operand.vmem [shape: f32[10,640], index: 10, kind: input, shape index: {}]   ;;  %s6450_s11 = inlined_call_operand.vmem [shape: f32[640,64], index: 11, kind: input, shape index: {}]   ;;  %s6451_s12 = inlined_call_operand.vmem [shape: f32[1,64], index: 12, kind: input, shape index: {}]   ;;  %s6452_s13 = inlined_call_operand.vmem [shape: f32[64,32], index: 13, kind: input, shape index: {}]   ;;  %s6453_s14 = inlined_call_operand.vmem [shape: f32[1,32], index: 14, kind: input, shape index: {}]   ;;  %s6454_s15 = inlined_call_operand.hbm [shape: f32[2,16,32], index: 15, kind: input, shape index: {}]   ;;  %s6455_s16 = inlined_call_operand.vmem [shape: f32[2,1,32], index: 16, kind: input, shape index: {}]   ;;  %s6456_s17 = inlined_call_operand.vmem [shape: f32[2,32,16], index: 17, kind: input, shape index: {}]   ;;  %s6457_s18 = inlined_call_operand.vmem [shape: f32[2,1,16], index: 18, kind: input, shape index: {}]   ;;  %s6458_s19 = inlined_call_operand.vmem [shape: f32[2,1,1], index: 19, kind: output, shape index: {}]  }
   0x1   :  { %6460 = sst [smem:[#allocation8_spill]] %s6439_s0 }
   0x2   :  { %6461 = sst [smem:[#allocation9_spill]] %s6440_s1 }
   0x3   :  { %6462 = sst [smem:[#allocation10_spill]] %s6441_s2 }
   0x4   :  { %6463 = sst [smem:[#allocation11_spill]] %s6442_s3 }
   0x5   :  { %24 = vsyncpa [#allocation3], 0 }
   0x6   :  { %25 = vsyncpa [#allocation5], 0  ;;  %s5099_s0 = smov 0  }
   0x7 LB: > { %s5105_s30 = sadd.s32 4294967295, %s4990_s0   ;;  %p3961_p0 = scmp.ge.s32.totalorder %s4990_s0, 1  ;;  %s4990_s0 = sphi %s5099_s0, %s31_s0  }
   0x8   : > { %p471_p1 = scmp.lt.s32.totalorder %s4990_s0, 3  ;;  %s4992_s20 = smov [#allocation2]  }
   0x9   : > { %s483_s21 = sshll.u32 %s4992_s20, 4  ;;  %p4895_p3 = scmp.eq.s32.totalorder %s5105_s30, 0  ;;  %s484_s21 = int_to_ptr.vmem [resolvable:$true] %s483_s21 }
   0xa   : > { %p5109_p2 = pnand %p3961_p0, %p471_p1  ;;  %s4993_s22 = smov [#allocation4]  }
   0xb   : > { %s532_s2 = sshll.u32 %s4993_s22, 4  ;;  %s4935_s24 = scalar_lea.vmem %s484_s21, 768  ;;  %s533_s2 = int_to_ptr.vmem [resolvable:$true] %s532_s2 }
   0xc   : > { %p4888_p4 = pneg %p5109_p2  ;;  %p4936_p7 = scmp.ne.s32.totalorder %s484_s21, %s4935_s24 }
   0xd   : > { %p4943_p10 = scmp.lt.s32.totalorder %s484_s21, %s484_s21  ;;  %p4944_p11 = scmp.lt.s32.totalorder %s4935_s24, %s4935_s24 }
   0xe   : > { %p5118_p5 = pnand %p4895_p3, %p4888_p4 }
   0xf   : > { %p4945_p12 = por %p4944_p11, %p4943_p10 }
  0x10   : > { %p4926_p6 = pneg %p5118_p5 }
  0x12   : > { %p4938_p8 = pnand %p4936_p7, %p4926_p6 }
  0x14   : > { %p4939_p9 = pneg %p4938_p8 }
  0x16   : > { %p4946_p13 = pnand %p4945_p12, %p4939_p9 }
  0x18   : > { %4949 = shalt.err (!%p4946_p13)
}
  0x19   : > { %s4994_s25 = smov 128   ;;  %s4995_s3 = smov 8  }
  0x1a   : > { %s6466_s28 = sld [smem:[#allocation10_spill]]  ;;  %s4961_s29 = scalar_lea.vmem %s533_s2, 512 }
  0x1b   : > { %p4962_p0 = scmp.ne.s32.totalorder %s533_s2, %s4961_s29  ;;  %p4969_p7 = scmp.lt.s32.totalorder %s533_s2, %s533_s2 }
  0x1c   : > { %p4970_p8 = scmp.lt.s32.totalorder %s4961_s29, %s4961_s29 }
  0x1d   : > { %p4964_p1 = pnand %p4962_p0, %p4926_p6 }
  0x1e   : > { %p4971_p10 = por %p4970_p8, %p4969_p7 }
  0x1f   : > { %p4965_p4 = pneg %p4964_p1 }
  0x20   : > { %4891 = dma.hbm_to_vmem [thread:$0]  (!%p5118_p5), %s6466_s28, 768, %s484_s21, [#allocation3], %s4994_s25, %s4994_s25, %s4995_s3  }
  0x21   : > { %p4972_p9 = pnand %p4971_p10, %p4965_p4 }
  0x23   : > { %4975 = shalt.err (!%p4972_p9)
}
  0x24   : > { %4894 = dma.hbm_to_vmem [thread:$0]  (!%p5118_p5), %s6454_s15, 512, %s533_s2, [#allocation5], %s4994_s25, %s4994_s25, %s4995_s3  }
  0x25   : > { %572 = sbr.rel (%p5109_p2) target bundleno = 3149 (0xc4d), region = 96 }
  0x2a   : > { %4981 = dma.done.wait (%p4895_p3), [#allocation3], 768  }
  0x2b   : > { %4983 = vsyncadd (%p4895_p3), [#allocation3], 4294966528 }
  0x2c   : > { %4985 = dma.done.wait (%p4895_p3), [#allocation5], 512  }
  0x2d   : > { %4987 = vsyncadd (%p4895_p3), [#allocation5], 4294966784  ;;  %s3968_s21 = sshll.u32 %s5105_s30, 1  ;;  %vm649_vm0 = vcmask 130048   ;;  %s6467_s24 = sld [smem:[#allocation8_spill]]  ;;  %v5158_v2 = vld [vmem:[#allocation2] sm:$0xff] }
  0x2e   : > { %p634_p6 = scmp.lt.s32.totalorder %s3968_s21, 3  ;;  %4450 = vmatprep.mubr.msk.f32.mxu1 %vm649_vm0, %v5158_v2  ;;  %v5164_v3 = vld [vmem:[#allocation2 + $0x8] sm:$0xff]  ;;  %s6468_s27 = sld [smem:[#allocation11_spill]]  ;;  %v5173_v6 = vld [vmem:[#allocation2 + $0x10] sm:$0xff]  ;;  %v5188_v9 = vld [vmem:[#allocation2 + $0x18] sm:$0xff]  ;;  %v4996_v25 = vmov 0.0  }
  0x2f   : > { %v4012_v24 = vld [vmem:[%s6443_s4 + $0x110] sm:$0xff]  ;;  %941 = vmatprep.mubr.f32.mxu0 %v4996_v25  ;;  %v4013_v26 = vld [vmem:[%s6443_s4 + $0x118] sm:$0xff]  ;;  %vm870_vm1 = vcmask 392192   ;;  %v4011_v30 = vld [vmem:[%s6443_s4 + $0x108] sm:$0xff]  ;;  %vm2881_vm2 = vcmask 654336   ;;  %vm3137_vm3 = vcmask 1041408  }
  0x30   : > { %s6471_s21 = smov (!%p634_p6, %s3968_s21), 3  ;;  %v4009_v32 = vld [vmem:[%s6443_s4 + $0xf8] sm:$0xff]  ;;  %v4008_v33 = vld [vmem:[%s6443_s4 + $0xf0] sm:$0xff]  ;;  %v4010_v34 = vld [vmem:[%s6443_s4 + $0x100] sm:$0xff]  ;;  %vm4997_vm4 = vmmov 0   ;;  %p639_p2 = scmp.lt.s32.totalorder %s5105_s30, 1 }
  0x31   : > { %s3969_s2 = sshll.u32 %s6471_s21, 3  ;;  %v4006_v35 = vld [vmem:[%s6443_s4 + $0xe0] sm:$0xff]  ;;  %v4007_v36 = vld [vmem:[%s6443_s4 + $0xe8] sm:$0xff]  ;;  %v4005_v37 = vld [vmem:[%s6443_s4 + $0xd8] sm:$0xff]  ;;  %vm3479_vm5 = vcmask 523264   ;;  %s6469_s28 = sld [smem:[#allocation9_spill]] }
  0x32   : > { %v4003_v38 = vld [vmem:[%s6443_s4 + $0xc8] sm:$0xff]  ;;  %v4004_v39 = vld [vmem:[%s6443_s4 + $0xd0] sm:$0xff]  ;;  %v4002_v40 = vld [vmem:[%s6443_s4 + $0xc0] sm:$0xff]  ;;  %s6473_s30 = smov (!%p639_p2, %s5105_s30), 1  ;;  %s4998_s20 = smov 112   ;;  %vm3636_vm6 = vcmask 261120  }
  0x33   : > { %s637_s25 = scalar_lea.vmem %s6467_s24, %s3969_s2  ;;  %v4000_v41 = vld [vmem:[%s6443_s4 + $0xb0] sm:$0xff]  ;;  %v4001_v42 = vld [vmem:[%s6443_s4 + $0xb8] sm:$0xff]  ;;  %v3999_v43 = vld [vmem:[%s6443_s4 + $0xa8] sm:$0xff]  ;;  %vm3875_vm7 = vcmask 122880   ;;  %s644_s23 = scalar_lea.vmem %s6458_s19, %s6473_s30  ;;  %vm3879_vm8 = vcmask 0  }
  0x34   : > { %v5154_v0 = vld [vmem:[%s637_s25 + $0x8] sm:$0xff]  ;;  %v5156_v1 = vld [vmem:[%s637_s25] sm:$0xff]  ;;  %v3990_v4 = vld [vmem:[%s6468_s27 + $0x110] sm:$0xff] }
  0x35   : > { %4446 = vmatprep.subr.mxu1 %v5154_v0  ;;  %v3989_v5 = vld [vmem:[%s6468_s27 + $0x108] sm:$0xff]  ;;  %897 = vmatprep.subr.mxu0 %v3990_v4  ;;  %v3987_v7 = vld [vmem:[%s6468_s27 + $0xf8] sm:$0xff]  ;;  %v3986_v8 = vld [vmem:[%s6468_s27 + $0xf0] sm:$0xff] }
  0x36   : > { %4447 = vmatpush3.msra.mxu1 %v5154_v0  ;;  %898 = vmatpush1.msra.mxu0 %v3989_v5  ;;  %v3991_v10 = vld [vmem:[%s6468_s27 + $0x118] sm:$0xff]  ;;  %v3984_v11 = vld [vmem:[%s6468_s27 + $0xe0] sm:$0xff]  ;;  %v3985_v14 = vld [vmem:[%s6468_s27 + $0xe8] sm:$0xff] }
  0x37   : > { %4448 = vmatprep.subr.mxu1 %v5156_v1  ;;  %899 = vmatprep.subr.mxu0 %v3987_v7  ;;  %v3988_v12 = vld [vmem:[%s6468_s27 + $0x100] sm:$0xff]  ;;  %v3983_v13 = vld [vmem:[%s6468_s27 + $0xd8] sm:$0xff]  ;;  %v3981_v15 = vld [vmem:[%s6468_s27 + $0xc8] sm:$0xff]  ;;  %s641_s29 = scalar_lea.vmem %s6469_s28, %s6473_s30 }
  0x38   : > { %4449 = vmatpush3.msra.mxu1 %v5156_v1  ;;  %900 = vmatpush1.msra.mxu0 %v3986_v8  ;;  %v3980_v16 = vld [vmem:[%s6468_s27 + $0xc0] sm:$0xff]  ;;  %v3982_v17 = vld [vmem:[%s6468_s27 + $0xd0] sm:$0xff]  ;;  %v3977_v19 = vld [vmem:[%s6468_s27 + $0xa8] sm:$0xff] }
  0x39   : > { %4451 = vmatmul.mubr.msk.f32.vlgmr.msra.gmra.mxu1 %vm649_vm0, %v5164_v3  ;;  %4453 = vmatprep.subr.mxu1 %v5154_v0  ;;  %v3978_v18 = vld [vmem:[%s6468_s27 + $0xb0] sm:$0xff]  ;;  %v3979_v20 = vld [vmem:[%s6468_s27 + $0xb8] sm:$0xff]  ;;  %v3976_v23 = vld [vmem:[%s6468_s27 + $0xa0] sm:$0xff] }
  0x3a   : > { %4454 = vmatpush3.msra.mxu1 %v5154_v0  ;;  %4457 = vmatprep.mubr.msk.f32.mxu1 %vm649_vm0, %v5173_v6  ;;  %v3975_v21 = vld [vmem:[%s6468_s27 + $0x98] sm:$0xff]  ;;  %v3974_v22 = vld [vmem:[%s6468_s27 + $0x90] sm:$0xff]  ;;  %v3998_v46 = vld [vmem:[%s6443_s4 + $0xa0] sm:$0xff] }
  0x3b   : > { %4455 = vmatprep.subr.mxu1 %v5156_v1  ;;  %901 = vmatprep.subr.mxu0 %v3984_v11  ;;  %v3997_v44 = vld [vmem:[%s6443_s4 + $0x98] sm:$0xff]  ;;  %v3996_v45 = vld [vmem:[%s6443_s4 + $0x90] sm:$0xff]  ;;  %v747_v47 = vld [vmem:[%s6468_s27 + $0x80] sm:$0xff] }
  0x3c   : > { %4456 = vmatpush3.msra.mxu1 %v5156_v1  ;;  %902 = vmatpush1.msra.mxu0 %v3983_v13  ;;  %v746_v48 = vld [vmem:[%s6468_s27 + $0x78] sm:$0xff]  ;;  %v748_v49 = vld [vmem:[%s6468_s27 + $0x88] sm:$0xff]  ;;  %v743_v51 = vld [vmem:[%s6468_s27 + $0x60] sm:$0xff] }
  0x3d   : > { %4458 = vmatmul.mubr.msk.f32.vlgmr.msra.gmra.mxu1 %vm649_vm0, %v5188_v9  ;;  %4460 = vmatprep.subr.mxu1 %v3991_v10  ;;  %v744_v50 = vld [vmem:[%s6468_s27 + $0x68] sm:$0xff]  ;;  %v745_v52 = vld [vmem:[%s6468_s27 + $0x70] sm:$0xff]  ;;  %v742_v55 = vld [vmem:[%s6468_s27 + $0x58] sm:$0xff] }
  0x3e   : > { %4461 = vmatpush3.msra.mxu1 %v3991_v10  ;;  %903 = vmatprep.subr.mxu0 %v3981_v15  ;;  %v741_v53 = vld [vmem:[%s6468_s27 + $0x50] sm:$0xff]  ;;  %v740_v54 = vld [vmem:[%s6468_s27 + $0x48] sm:$0xff]  ;;  %v738_v56 = vld [vmem:[%s6468_s27 + $0x38] sm:$0xff] }
  0x3f   : > { %4462 = vmatprep.subr.mxu1 %v3988_v12  ;;  %904 = vmatpush1.msra.mxu0 %v3980_v16  ;;  %v737_v57 = vld [vmem:[%s6468_s27 + $0x30] sm:$0xff]  ;;  %v739_v58 = vld [vmem:[%s6468_s27 + $0x40] sm:$0xff]  ;;  %v734_v60 = vld [vmem:[%s6468_s27 + $0x18] sm:$0xff] }
  0x40   : > { %4463 = vmatpush3.msra.mxu1 %v3988_v12  ;;  %905 = vmatprep.subr.mxu0 %v3978_v18  ;;  %v735_v59 = vld [vmem:[%s6468_s27 + $0x20] sm:$0xff]  ;;  %v736_v61 = vld [vmem:[%s6468_s27 + $0x28] sm:$0xff]  ;;  %v733_v4 = vld [vmem:[%s6468_s27 + $0x10] sm:$0xff] }
  0x41   : > { %4464 = vmatprep.subr.mxu1 %v3985_v14  ;;  %906 = vmatpush1.msra.mxu0 %v3977_v19  ;;  %v732_v62 = vld [vmem:[%s6468_s27 + $0x8] sm:$0xff]  ;;  %v731_v63 = vld [vmem:[%s6468_s27] sm:$0xff]  ;;  %v764_v7 = vld [vmem:[%s6443_s4 + $0x78] sm:$0xff] }
  0x42   : > { %4465 = vmatpush3.msra.mxu1 %v3985_v14  ;;  %907 = vmatprep.subr.mxu0 %v3975_v21  ;;  %v765_v5 = vld [vmem:[%s6443_s4 + $0x80] sm:$0xff]  ;;  %v766_v8 = vld [vmem:[%s6443_s4 + $0x88] sm:$0xff]  ;;  %v763_v12 = vld [vmem:[%s6443_s4 + $0x70] sm:$0xff] }
  0x43   : > { %4466 = vmatprep.subr.mxu1 %v3982_v17  ;;  %908 = vmatpush1.msra.mxu0 %v3974_v22  ;;  %v762_v10 = vld [vmem:[%s6443_s4 + $0x68] sm:$0xff]  ;;  %v761_v11 = vld [vmem:[%s6443_s4 + $0x60] sm:$0xff]  ;;  %v759_v13 = vld [vmem:[%s6443_s4 + $0x50] sm:$0xff] }
  0x44   : > { %4467 = vmatpush3.msra.mxu1 %v3982_v17  ;;  %1068 = vmatprep.subr.mxu0 %v4012_v24  ;;  %v758_v14 = vld [vmem:[%s6443_s4 + $0x48] sm:$0xff]  ;;  %v760_v15 = vld [vmem:[%s6443_s4 + $0x58] sm:$0xff]  ;;  %v755_v17 = vld [vmem:[%s6443_s4 + $0x30] sm:$0xff] }
  0x45   : > { %4468 = vmatprep.subr.mxu1 %v3979_v20  ;;  %v756_v16 = vld [vmem:[%s6443_s4 + $0x38] sm:$0xff]  ;;  %v757_v18 = vld [vmem:[%s6443_s4 + $0x40] sm:$0xff]  ;;  %v754_v21 = vld [vmem:[%s6443_s4 + $0x28] sm:$0xff] }
  0x46   : > { %4469 = vmatpush3.msra.mxu1 %v3979_v20  ;;  %v753_v19 = vld [vmem:[%s6443_s4 + $0x20] sm:$0xff]  ;;  %v752_v20 = vld [vmem:[%s6443_s4 + $0x18] sm:$0xff]  ;;  %v750_v22 = vld [vmem:[%s6443_s4 + $0x8] sm:$0xff] }
  0x47   : > { %4470 = vmatprep.subr.mxu1 %v3976_v23  ;;  %v751_v24 = vld [vmem:[%s6443_s4 + $0x10] sm:$0xff] }
  0x48   : > { %4471 = vmatpush3.msra.mxu1 %v3976_v23  ;;  %v749_v23 = vld [vmem:[%s6443_s4] sm:$0xff] }
  0x49   : > { %4475 = vmatprep.subr.mxu1 %v4013_v26 }
  0xf9   : > { %v5243_v27 = vpop.f32.mrf.mxu1 }
  0xfb   : > { %v5245_v28 = vpop.f32.mrf.mxu1 }
  0xfd   : > { %v5247_v29 = vpop.f32.mrf.mxu1 }
  0xff   : > { %v842_v31 = vpop.f32.mrf.mxu1 }
 0x100   : > { %3992 = vmatmul.mubr.msk.f32.vlgmr.msra.gmra.mxu0 %vm870_vm1, %v842_v31  ;;  %4472 = vmatprep.mubr.msk.f32.mxu1 %vm870_vm1, %v842_v31 }
 0x101   : > { %1069 = vmatpush1.msra.mxu0 %v4011_v30  ;;  %4473 = vmatmul.mubr.msk.f32.vlgmr.msra.gmra.mxu1 %vm870_vm1, %v5247_v29  ;;  %v4045_v30 = vld [vmem:[%s6468_s27 + $0x1a8] sm:$0xff] }
 0x102   : > { %1070 = vmatprep.subr.mxu0 %v4009_v32  ;;  %4476 = vmatpush3.msra.mxu1 %v4013_v26  ;;  %v5435_v26 = vld [vmem:[#allocation2 + $0x20] sm:$0xff]  ;;  %v4038_v32 = vld [vmem:[%s6468_s27 + $0x170] sm:$0xff] }
 0x103   : > { %1071 = vmatpush1.msra.mxu0 %v4008_v33  ;;  %4477 = vmatprep.subr.mxu1 %v4010_v34  ;;  %v4037_v33 = vld [vmem:[%s6468_s27 + $0x168] sm:$0xff] }
 0x104   : > { %4487 = vmatprep.mubr.msk.f32.mxu1 %vm870_vm1, %v842_v31  ;;  %947 = vmatprep.mubr.f32.mxu0 %v4996_v25 }
 0x105   : > { %1072 = vmatprep.subr.mxu0 %v4006_v35  ;;  %4478 = vmatpush3.msra.mxu1 %v4010_v34  ;;  %v4039_v34 = vld [vmem:[%s6468_s27 + $0x178] sm:$0xff] }
 0x106   : > { %3993 = vmatmul.mubr.msk.f32.gmra.mxu0 %vm870_vm1, %v5247_v29  ;;  %4479 = vmatprep.subr.mxu1 %v4007_v36  ;;  %v4035_v35 = vld [vmem:[%s6468_s27 + $0x158] sm:$0xff] }
 0x107   : > { %1073 = vmatpush1.msra.mxu0 %v4005_v37  ;;  %4480 = vmatpush3.msra.mxu1 %v4007_v36  ;;  %v4034_v36 = vld [vmem:[%s6468_s27 + $0x150] sm:$0xff]  ;;  %v4036_v37 = vld [vmem:[%s6468_s27 + $0x160] sm:$0xff] }
 0x108   : > { %1074 = vmatprep.subr.mxu0 %v4003_v38  ;;  %4481 = vmatprep.subr.mxu1 %v4004_v39  ;;  %v4032_v38 = vld [vmem:[%s6468_s27 + $0x140] sm:$0xff] }
 0x109   : > { %1075 = vmatpush1.msra.mxu0 %v4002_v40  ;;  %4482 = vmatpush3.msra.mxu1 %v4004_v39  ;;  %v4031_v39 = vld [vmem:[%s6468_s27 + $0x138] sm:$0xff]  ;;  %v4033_v40 = vld [vmem:[%s6468_s27 + $0x148] sm:$0xff] }
 0x10a   : > { %1076 = vmatprep.subr.mxu0 %v4000_v41  ;;  %4483 = vmatprep.subr.mxu1 %v4001_v42  ;;  %v4029_v41 = vld [vmem:[%s6468_s27 + $0x128] sm:$0xff] }
 0x10b   : > { %1077 = vmatpush1.msra.mxu0 %v3999_v43  ;;  %4484 = vmatpush3.msra.mxu1 %v4001_v42  ;;  %v4028_v42 = vld [vmem:[%s6468_s27 + $0x120] sm:$0xff]  ;;  %v4030_v43 = vld [vmem:[%s6468_s27 + $0x130] sm:$0xff] }
 0x10c   : > { %1078 = vmatprep.subr.mxu0 %v3997_v44  ;;  %1112 = vmatprep.mubr.f32.mxu0 %v4996_v25  ;;  %v4066_v44 = vld [vmem:[%s6443_s4 + $0x1a0] sm:$0xff] }
 0x10d   : > { %1079 = vmatpush1.msra.mxu0 %v3996_v45  ;;  %4485 = vmatprep.subr.mxu1 %v3998_v46  ;;  %v4067_v45 = vld [vmem:[%s6443_s4 + $0x1a8] sm:$0xff] }
 0x10e   : > { %4014 = vmatmul.mubr.msk.f32.vlgmr.msra.gmra.mxu0 %vm870_vm1, %v842_v31  ;;  %4486 = vmatpush3.msra.mxu1 %v3998_v46  ;;  %v4042_v31 = vld [vmem:[%s6468_s27 + $0x190] sm:$0xff] }
 0x10f   : > { %1226 = vmatprep.subr.mxu0 %v747_v47  ;;  %4488 = vmatmul.mubr.msk.f32.vlgmr.msra.gmra.mxu1 %vm870_vm1, %v5247_v29 }
 0x110   : > { %1227 = vmatpush1.msra.mxu0 %v746_v48  ;;  %4490 = vmatprep.subr.mxu1 %v748_v49 }
 0x111   : > { %1228 = vmatprep.subr.mxu0 %v744_v50  ;;  %4491 = vmatpush3.msra.mxu1 %v748_v49 }
 0x112   : > { %4502 = vmatprep.mubr.msk.f32.mxu1 %vm870_vm1, %v5245_v28  ;;  %1118 = vmatprep.mubr.f32.mxu0 %v4996_v25 }
 0x113   : > { %1229 = vmatpush1.msra.mxu0 %v743_v51  ;;  %4492 = vmatprep.subr.mxu1 %v745_v52 }
 0x114   : > { %4015 = vmatmul.mubr.msk.f32.gmra.mxu0 %vm870_vm1, %v5247_v29  ;;  %1230 = vmatprep.subr.mxu0 %v741_v53  ;;  %v5442_v29 = vld [vmem:[#allocation2 + $0x28] sm:$0xff] }
 0x115   : > { %4493 = vmatpush3.msra.mxu1 %v745_v52  ;;  %1231 = vmatpush1.msra.mxu0 %v740_v54 }
 0x116   : > { %4494 = vmatprep.subr.mxu1 %v742_v55  ;;  %1232 = vmatprep.subr.mxu0 %v738_v56 }
 0x117   : > { %4495 = vmatpush3.msra.mxu1 %v742_v55  ;;  %1233 = vmatpush1.msra.mxu0 %v737_v57 }
 0x118   : > { %4496 = vmatprep.subr.mxu1 %v739_v58  ;;  %1234 = vmatprep.subr.mxu0 %v735_v59  ;;  %v4065_v59 = vld [vmem:[%s6443_s4 + $0x198] sm:$0xff] }
 0x119   : > { %4497 = vmatpush3.msra.mxu1 %v739_v58  ;;  %1235 = vmatpush1.msra.mxu0 %v734_v60 }
 0x11a   : > { %4498 = vmatprep.subr.mxu1 %v736_v61  ;;  %1236 = vmatprep.subr.mxu0 %v732_v62  ;;  %v4062_v62 = vld [vmem:[%s6443_s4 + $0x180] sm:$0xff] }
 0x11b   : > { %4499 = vmatpush3.msra.mxu1 %v736_v61  ;;  %1237 = vmatpush1.msra.mxu0 %v731_v63  ;;  %v4063_v61 = vld [vmem:[%s6443_s4 + $0x188] sm:$0xff]  ;;  %v4064_v63 = vld [vmem:[%s6443_s4 + $0x190] sm:$0xff] }
 0x11c   : > { %1270 = vmatprep.mubr.f32.mxu0 %v4996_v25  ;;  %4500 = vmatprep.subr.mxu1 %v733_v4 }
 0x11d   : > { %4018 = vmatmul.mubr.msk.f32.vlgmr.msra.gmra.mxu0 %vm870_vm1, %v5245_v28  ;;  %4501 = vmatpush3.msra.mxu1 %v733_v4  ;;  %v4060_v4 = vld [vmem:[%s6443_s4 + $0x170] sm:$0xff] }
 0x11e   : > { %1378 = vmatprep.subr.mxu0 %v765_v5  ;;  %4503 = vmatmul.mubr.msk.f32.vlgmr.msra.gmra.mxu1 %vm870_vm1, %v5243_v27  ;;  %v4061_v5 = vld [vmem:[%s6443_s4 + $0x178] sm:$0xff] }
 0x11f   : > { %1379 = vmatpush1.msra.mxu0 %v764_v7  ;;  %4505 = vmatprep.subr.mxu1 %v766_v8  ;;  %v4059_v7 = vld [vmem:[%s6443_s4 + $0x168] sm:$0xff] }
 0x120   : > { %1380 = vmatprep.subr.mxu0 %v762_v10  ;;  %4506 = vmatpush3.msra.mxu1 %v766_v8  ;;  %v4057_v8 = vld [vmem:[%s6443_s4 + $0x158] sm:$0xff]  ;;  %v4058_v10 = vld [vmem:[%s6443_s4 + $0x160] sm:$0xff] }
 0x121   : > { %4517 = vmatprep.mubr.msk.f32.mxu1 %vm870_vm1, %v5245_v28  ;;  %1276 = vmatprep.mubr.f32.mxu0 %v4996_v25 }
 0x122   : > { %1381 = vmatpush1.msra.mxu0 %v761_v11  ;;  %4507 = vmatprep.subr.mxu1 %v763_v12  ;;  %v4056_v11 = vld [vmem:[%s6443_s4 + $0x150] sm:$0xff] }
 0x123   : > { %4019 = vmatmul.mubr.msk.f32.gmra.mxu0 %vm870_vm1, %v5243_v27  ;;  %1382 = vmatprep.subr.mxu0 %v759_v13  ;;  %v4055_v13 = vld [vmem:[%s6443_s4 + $0x148] sm:$0xff] }
 0x124   : > { %4508 = vmatpush3.msra.mxu1 %v763_v12  ;;  %1383 = vmatpush1.msra.mxu0 %v758_v14  ;;  %v4054_v12 = vld [vmem:[%s6443_s4 + $0x140] sm:$0xff]  ;;  %v4053_v14 = vld [vmem:[%s6443_s4 + $0x138] sm:$0xff] }
 0x125   : > { %4509 = vmatprep.subr.mxu1 %v760_v15  ;;  %1384 = vmatprep.subr.mxu0 %v756_v16  ;;  %v4050_v16 = vld [vmem:[%s6443_s4 + $0x120] sm:$0xff] }
 0x126   : > { %4510 = vmatpush3.msra.mxu1 %v760_v15  ;;  %1385 = vmatpush1.msra.mxu0 %v755_v17  ;;  %v4051_v15 = vld [vmem:[%s6443_s4 + $0x128] sm:$0xff]  ;;  %v4052_v17 = vld [vmem:[%s6443_s4 + $0x130] sm:$0xff] }
 0x127   : > { %4511 = vmatprep.subr.mxu1 %v757_v18  ;;  %1386 = vmatprep.subr.mxu0 %v753_v19 }
 0x128   : > { %4512 = vmatpush3.msra.mxu1 %v757_v18  ;;  %1387 = vmatpush1.msra.mxu0 %v752_v20 }
 0x129   : > { %4513 = vmatprep.subr.mxu1 %v754_v21  ;;  %1388 = vmatprep.subr.mxu0 %v750_v22 }
 0x12a   : > { %4514 = vmatpush3.msra.mxu1 %v754_v21  ;;  %1389 = vmatpush1.msra.mxu0 %v749_v23 }
 0x12b   : > { %1422 = vmatprep.mubr.f32.mxu0 %v4996_v25  ;;  %4515 = vmatprep.subr.mxu1 %v751_v24 }
 0x12c   : > { %4022 = vmatmul.mubr.msk.f32.vlgmr.msra.gmra.mxu0 %vm870_vm1, %v5245_v28  ;;  %4516 = vmatpush3.msra.mxu1 %v751_v24  ;;  %v4043_v28 = vld [vmem:[%s6468_s27 + $0x198] sm:$0xff] }
 0x12d   : > { %4518 = vmatmul.mubr.msk.f32.vlgmr.msra.gmra.mxu1 %vm870_vm1, %v5243_v27  ;;  %4520 = vmatprep.subr.mxu1 %v5154_v0 }
 0x12e   : > { %4521 = vmatpush3.msra.mxu1 %v5154_v0  ;;  %1428 = vmatprep.mubr.f32.mxu0 %v4996_v25  ;;  %v4044_v0 = vld [vmem:[%s6468_s27 + $0x1a0] sm:$0xff] }
 0x12f   : > { %4522 = vmatprep.subr.mxu1 %v5156_v1  ;;  %4524 = vmatprep.mubr.msk.f32.mxu1 %vm649_vm0, %v5435_v26 }
 0x130   : > { %4023 = vmatmul.mubr.msk.f32.gmra.mxu0 %vm870_vm1, %v5243_v27  ;;  %4523 = vmatpush3.msra.mxu1 %v5156_v1  ;;  %v4041_v1 = vld [vmem:[%s6468_s27 + $0x188] sm:$0xff]  ;;  %v4040_v27 = vld [vmem:[%s6468_s27 + $0x180] sm:$0xff] }
 0x131   : > { %4525 = vmatmul.mubr.msk.f32.vlgmr.msra.gmra.mxu1 %vm649_vm0, %v5442_v29  ;;  %1683 = vmatprep.mubr.f32.mxu0 %v4996_v25 }
 0x132   : > { %1639 = vmatprep.subr.mxu0 %v4044_v0  ;;  %4527 = vmatprep.subr.mxu1 %v4045_v30 }
 0x133   : > { %1640 = vmatpush1.msra.mxu0 %v4043_v28  ;;  %4528 = vmatpush3.msra.mxu1 %v4045_v30 }
 0x134   : > { %1641 = vmatprep.subr.mxu0 %v4041_v1  ;;  %4529 = vmatprep.subr.mxu1 %v4042_v31 }
 0x135   : > { %1642 = vmatpush1.msra.mxu0 %v4040_v27  ;;  %4530 = vmatpush3.msra.mxu1 %v4042_v31 }
 0x136   : > { %1643 = vmatprep.subr.mxu0 %v4038_v32  ;;  %4531 = vmatprep.subr.mxu1 %v4039_v34 }
 0x137   : > { %1644 = vmatpush1.msra.mxu0 %v4037_v33  ;;  %4532 = vmatpush3.msra.mxu1 %v4039_v34 }
 0x138   : > { %1645 = vmatprep.subr.mxu0 %v4035_v35  ;;  %4533 = vmatprep.subr.mxu1 %v4036_v37 }
 0x139   : > { %1646 = vmatpush1.msra.mxu0 %v4034_v36  ;;  %4534 = vmatpush3.msra.mxu1 %v4036_v37 }
 0x13a   : > { %1647 = vmatprep.subr.mxu0 %v4032_v38  ;;  %4535 = vmatprep.subr.mxu1 %v4033_v40 }
 0x13b   : > { %1648 = vmatpush1.msra.mxu0 %v4031_v39  ;;  %4536 = vmatpush3.msra.mxu1 %v4033_v40 }
 0x13c   : > { %1649 = vmatprep.subr.mxu0 %v4029_v41  ;;  %4537 = vmatprep.subr.mxu1 %v4030_v43 }
 0x13d   : > { %1650 = vmatpush1.msra.mxu0 %v4028_v42  ;;  %4538 = vmatpush3.msra.mxu1 %v4030_v43 }
 0x13e   : > { %1810 = vmatprep.subr.mxu0 %v4066_v44  ;;  %4542 = vmatprep.subr.mxu1 %v4067_v45 }
 0x1c0   : > { %v943_v18 = vpop.f32.mrf.mxu0 }
 0x1c1   : > { %v4474_v46 = vpop.f32.mrf.mxu1 }
 0x1c2   : > { %v945_v19 = vpop.f32.mrf.mxu0 }
 0x1c3   : > { %v1020_v47 = vpop.f32.mrf.mxu1 }
 0x1c6   : > { %v949_v20 = vpop.f32.mrf.mxu0 }
 0x1c8   : > { %v951_v21 = vpop.f32.mrf.mxu0 }
 0x1ce   : > { %v1114_v22 = vpop.f32.mrf.mxu0 }
 0x1cf   : > { %v4489_v48 = vpop.f32.mrf.mxu1 }
 0x1d0   : > { %v1116_v23 = vpop.f32.mrf.mxu0 }
 0x1d1   : > { %v1191_v49 = vpop.f32.mrf.mxu1 }
 0x1d4   : > { %v1120_v24 = vpop.f32.mrf.mxu0 }
 0x1d6   : > { %v1122_v0 = vpop.f32.mrf.mxu0 }
 0x1dd   : > { %v1272_v28 = vpop.f32.mrf.mxu0 }
 0x1de   : > { %v4504_v50 = vpop.f32.mrf.mxu1  ;;  %v1273_v42 = vadd.f32 %v1272_v28, %v943_v18  ;;  %v2054_v18 = vld [vmem:[%s6444_s5 + $0x78] sm:$0xff]  ;;  %v2049_v28 = vld [vmem:[%s6444_s5 + $0x50] sm:$0xff] }
 0x1df   : > { %v5513_v51 = vadd.f32 %v4504_v50, %v4474_v46  ;;  %v1274_v30 = vpop.f32.mrf.mxu0 }
 0x1e0   : > { %v1349_v52 = vpop.f32.mrf.mxu1  ;;  %v1275_v43 = vadd.f32 %v1274_v30, %v945_v19  ;;  %v4090_v19 = vld [vmem:[%s6444_s5 + $0xf0] sm:$0xff]  ;;  %v4085_v30 = vld [vmem:[%s6444_s5 + $0xc8] sm:$0xff] }
 0x1e1   : > { %v5515_v53 = vadd.f32 %v1349_v52, %v1020_v47 }
 0x1e3   : > { %v1278_v1 = vpop.f32.mrf.mxu0 }
 0x1e4   : > { %v1279_v47 = vadd.f32 %v1278_v1, %v949_v20  ;;  %v2053_v20 = vld [vmem:[%s6444_s5 + $0x70] sm:$0xff]  ;;  %v2048_v1 = vld [vmem:[%s6444_s5 + $0x48] sm:$0xff] }
 0x1e5   : > { %v1280_v27 = vpop.f32.mrf.mxu0 }
 0x1ec   : > { %v1424_v31 = vpop.f32.mrf.mxu0 }
 0x1ed   : > { %v4519_v54 = vpop.f32.mrf.mxu1 }
 0x1ee   : > { %v5517_v55 = vadd.f32 %v4519_v54, %v4489_v48  ;;  %v1426_v32 = vpop.f32.mrf.mxu0  ;;  %v1425_v48 = vadd.f32 %v1424_v31, %v1114_v22  ;;  %v1281_v54 = vadd.f32 %v1280_v27, %v951_v21  ;;  %v4089_v21 = vld [vmem:[%s6444_s5 + $0xe8] sm:$0xff]  ;;  %v2051_v22 = vld [vmem:[%s6444_s5 + $0x60] sm:$0xff] }
 0x1ef   : > { %v1501_v56 = vpop.f32.mrf.mxu1  ;;  %v1427_v40 = vadd.f32 %v1426_v32, %v1116_v23  ;;  %v4087_v23 = vld [vmem:[%s6444_s5 + $0xd8] sm:$0xff]  ;;  %v4084_v27 = vld [vmem:[%s6444_s5 + $0xc0] sm:$0xff] }
 0x1f0   : > { %v5519_v57 = vadd.f32 %v1501_v56, %v1191_v49  ;;  %v2047_v31 = vld [vmem:[%s6444_s5 + $0x40] sm:$0xff]  ;;  %v4083_v32 = vld [vmem:[%s6444_s5 + $0xb8] sm:$0xff] }
 0x1f1   : > { %v4526_v58 = vpop.f32.mrf.mxu1 }
 0x1f3   : > { %v1585_v60 = vpop.f32.mrf.mxu1 }
 0x1f4   : > { %4046 = vmatmul.mubr.msk.f32.vlgmr.msra.gmra.mxu0 %vm870_vm1, %v1585_v60  ;;  %4539 = vmatprep.mubr.msk.f32.mxu1 %vm870_vm1, %v1585_v60 }
 0x1f5   : > { %1811 = vmatpush1.msra.mxu0 %v4065_v59  ;;  %4540 = vmatmul.mubr.msk.f32.vlgmr.msra.gmra.mxu1 %vm870_vm1, %v4526_v58 }
 0x1f6   : > { %1812 = vmatprep.subr.mxu0 %v4063_v61  ;;  %4543 = vmatpush3.msra.mxu1 %v4067_v45 }
 0x1f7   : > { %1813 = vmatpush1.msra.mxu0 %v4062_v62  ;;  %4544 = vmatprep.subr.mxu1 %v4064_v63 }
 0x1f8   : > { %4554 = vmatprep.mubr.msk.f32.mxu1 %vm870_vm1, %v1585_v60  ;;  %1689 = vmatprep.mubr.f32.mxu0 %v4996_v25 }
 0x1f9   : > { %1814 = vmatprep.subr.mxu0 %v4060_v4  ;;  %4545 = vmatpush3.msra.mxu1 %v4064_v63 }
 0x1fa   : > { %4047 = vmatmul.mubr.msk.f32.gmra.mxu0 %vm870_vm1, %v4526_v58  ;;  %4546 = vmatprep.subr.mxu1 %v4061_v5 }
 0x1fb   : > { %1815 = vmatpush1.msra.mxu0 %v4059_v7  ;;  %4547 = vmatpush3.msra.mxu1 %v4061_v5 }
 0x1fc   : > { %1816 = vmatprep.subr.mxu0 %v4057_v8  ;;  %4548 = vmatprep.subr.mxu1 %v4058_v10 }
 0x1fd   : > { %1817 = vmatpush1.msra.mxu0 %v4056_v11  ;;  %4549 = vmatpush3.msra.mxu1 %v4058_v10 }
 0x1fe   : > { %1818 = vmatprep.subr.mxu0 %v4054_v12  ;;  %4550 = vmatprep.subr.mxu1 %v4055_v13 }
 0x1ff   : > { %1819 = vmatpush1.msra.mxu0 %v4053_v14  ;;  %4551 = vmatpush3.msra.mxu1 %v4055_v13 }
 0x200   : > { %1820 = vmatprep.subr.mxu0 %v4051_v15  ;;  %1854 = vmatprep.mubr.f32.mxu0 %v4996_v25 }
 0x201   : > { %1821 = vmatpush1.msra.mxu0 %v4050_v16  ;;  %4552 = vmatprep.subr.mxu1 %v4052_v17 }
 0x202   : > { %4068 = vmatmul.mubr.msk.f32.vlgmr.msra.gmra.mxu0 %vm870_vm1, %v1585_v60  ;;  %4553 = vmatpush3.msra.mxu1 %v4052_v17  ;;  %v4091_v17 = vld [vmem:[%s6444_s5 + $0xf8] sm:$0xff] }
 0x203   : > { %4555 = vmatmul.mubr.msk.f32.vlgmr.msra.gmra.mxu1 %vm870_vm1, %v4526_v58  ;;  %1860 = vmatprep.mubr.f32.mxu0 %v4996_v25 }
 0x204   : > { %4568 = vmatprep.mubr.msk.f32.mxu1 %vm649_vm0, %v5173_v6  ;;  %v1430_v6 = vpop.f32.mrf.mxu0 }
 0x205   : > { %v1431_v49 = vadd.f32 %v1430_v6, %v1120_v24  ;;  %v2050_v24 = vld [vmem:[%s6444_s5 + $0x58] sm:$0xff] }
 0x206   : > { %4069 = vmatmul.mubr.msk.f32.gmra.mxu0 %vm870_vm1, %v4526_v58  ;;  %v1432_v33 = vpop.f32.mrf.mxu0  ;;  %v2046_v6 = vld [vmem:[%s6444_s5 + $0x38] sm:$0xff] }
 0x207   : > { %4561 = vmatprep.mubr.msk.f32.mxu0 %vm649_vm0, %v5158_v2  ;;  %v1433_v61 = vadd.f32 %v1432_v33, %v1122_v0  ;;  %v4086_v0 = vld [vmem:[%s6444_s5 + $0xd0] sm:$0xff] }
 0x208   : > { %v4082_v33 = vld [vmem:[%s6444_s5 + $0xb0] sm:$0xff] }
 0x2b4   : > { %v1685_v34 = vpop.f32.mrf.mxu0 }
 0x2b5   : > { %v4541_v2 = vpop.f32.mrf.mxu1 }
 0x2b6   : > { %v1687_v35 = vpop.f32.mrf.mxu0  ;;  %v1947_v44 = vadd.f32 %v4541_v2, %v5513_v51  ;;  %v1942_v51 = vadd.f32 %v1685_v34, %v1273_v42  ;;  %v2045_v34 = vld [vmem:[%s6444_s5 + $0x30] sm:$0xff]  ;;  %v4080_v2 = vld [vmem:[%s6444_s5 + $0xa0] sm:$0xff]  ;;  %v4077_v42 = vld [vmem:[%s6444_s5 + $0x88] sm:$0xff] }
 0x2b7   : > { %v1762_v38 = vpop.f32.mrf.mxu1  ;;  %v1943_v62 = vadd.f32 %v1687_v35, %v1275_v43  ;;  %v4081_v35 = vld [vmem:[%s6444_s5 + $0xa8] sm:$0xff]  ;;  %v4076_v43 = vld [vmem:[%s6444_s5 + $0x80] sm:$0xff] }
 0x2b8   : > { %v1944_v56 = vadd.f32 %v1762_v38, %v5515_v53  ;;  %v4079_v38 = vld [vmem:[%s6444_s5 + $0x98] sm:$0xff] }
 0x2ba   : > { %v1691_v36 = vpop.f32.mrf.mxu0 }
 0x2bb   : > { %v1945_v7 = vadd.f32 %v1691_v36, %v1279_v47  ;;  %v2044_v36 = vld [vmem:[%s6444_s5 + $0x28] sm:$0xff] }
 0x2bc   : > { %v1693_v37 = vpop.f32.mrf.mxu0 }
 0x2bd   : > { %v1946_v8 = vadd.f32 %v1693_v37, %v1281_v54  ;;  %v2043_v37 = vld [vmem:[%s6444_s5 + $0x20] sm:$0xff]  ;;  %v4107_v54 = vld [vmem:[%s6444_s5 + $0x168] sm:$0xff] }
 0x2c2   : > { %v1856_v39 = vpop.f32.mrf.mxu0 }
 0x2c3   : > { %v4556_v41 = vpop.f32.mrf.mxu1  ;;  %v1948_v63 = vadd.f32 %v1856_v39, %v1425_v48  ;;  %v2042_v39 = vld [vmem:[%s6444_s5 + $0x18] sm:$0xff] }
 0x2c4   : > { %v1953_v45 = vadd.f32 %v4556_v41, %v5517_v55  ;;  %v1858_v46 = vpop.f32.mrf.mxu0  ;;  %v2041_v41 = vld [vmem:[%s6444_s5 + $0x10] sm:$0xff] }
 0x2c5   : > { %v1949_v50 = vadd.f32 %v1858_v46, %v1427_v40  ;;  %v1933_v52 = vpop.f32.mrf.mxu1  ;;  %v1954_v12 = vmul.f32 %v1948_v63, %v1942_v51  ;;  %v4078_v40 = vld [vmem:[%s6444_s5 + $0x90] sm:$0xff]  ;;  %v4109_v46 = vld [vmem:[%s6444_s5 + $0x178] sm:$0xff]  ;;  %v4098_v63 = vld [vmem:[%s6444_s5 + $0x120] sm:$0xff] }
 0x2c6   : > { %v1959_v58 = vmul.f32 %v1953_v45, %v1947_v44  ;;  %v1950_v59 = vadd.f32 %v1933_v52, %v5519_v57  ;;  %v1862_v60 = vpop.f32.mrf.mxu0  ;;  %v2040_v44 = vld [vmem:[%s6444_s5 + $0x8] sm:$0xff]  ;;  %v2039_v45 = vld [vmem:[%s6444_s5] sm:$0xff]  ;;  %v4108_v52 = vld [vmem:[%s6444_s5 + $0x170] sm:$0xff] }
 0x2c7   : > { %v1951_v4 = vadd.f32 %v1862_v60, %v1431_v49  ;;  %v1955_v10 = vmul.f32 %v1949_v50, %v1943_v62  ;;  %v4101_v60 = vld [vmem:[%s6444_s5 + $0x138] sm:$0xff]  ;;  %v4099_v62 = vld [vmem:[%s6444_s5 + $0x128] sm:$0xff]  ;;  %v4096_v51 = vld [vmem:[%s6444_s5 + $0x110] sm:$0xff] }
 0x2c8   : > { %v1956_v5 = vmul.f32 %v1950_v59, %v1944_v56  ;;  %v1864_v55 = vpop.f32.mrf.mxu0  ;;  %v4106_v56 = vld [vmem:[%s6444_s5 + $0x160] sm:$0xff] }
 0x2c9   : > { %v1952_v11 = vadd.f32 %v1864_v55, %v1433_v61  ;;  %v1957_v13 = vmul.f32 %v1951_v4, %v1945_v7  ;;  %v1960_v15 = vadd.f32 %v1955_v10, %v1954_v12  ;;  %v4102_v59 = vld [vmem:[%s6444_s5 + $0x140] sm:$0xff]  ;;  %v4100_v61 = vld [vmem:[%s6444_s5 + $0x130] sm:$0xff]  ;;  %v4097_v4 = vld [vmem:[%s6444_s5 + $0x118] sm:$0xff] }
 0x2ca   : > { %v4094_v55 = vld [vmem:[%s6444_s5 + $0x100] sm:$0xff] }
 0x2cb   : > { %v1958_v14 = vmul.f32 %v1952_v11, %v1946_v8  ;;  %v5590_v57 = vadd.f32 %v1960_v15, %v1956_v5  ;;  %v4095_v5 = vld [vmem:[%s6444_s5 + $0x108] sm:$0xff]  ;;  %v2466_v12 = vld [vmem:[%s6445_s6] sm:$0xff] }
 0x2cc   : > { %v4129_v15 = vld [vmem:[%s6446_s7 + $0xe8] sm:$0xff] }
 0x2cd   : > { %v1961_v53 = vadd.f32 %v1958_v14, %v1957_v13  ;;  %v4131_v13 = vld [vmem:[%s6446_s7 + $0xf8] sm:$0xff]  ;;  %v4130_v14 = vld [vmem:[%s6446_s7 + $0xf0] sm:$0xff] }
 0x2cf   : > { %v5588_v16 = vadd.f32 %v1961_v53, %v1959_v58  ;;  %v4104_v58 = vld [vmem:[%s6444_s5 + $0x150] sm:$0xff]  ;;  %v4128_v53 = vld [vmem:[%s6446_s7 + $0xe0] sm:$0xff] }
 0x2d1   : > { %4557 = vmatprep.subr.mxu0 %v5588_v16  ;;  %4564 = vmatprep.subr.mxu1 %v5588_v16 }
 0x2d2   : > { %4558 = vmatpush3.msra.mxu0 %v5588_v16  ;;  %4565 = vmatpush3.msra.mxu1 %v5588_v16 }
 0x2d3   : > { %4559 = vmatprep.subr.mxu0 %v5590_v57  ;;  %4566 = vmatprep.subr.mxu1 %v5590_v57 }
 0x2d4   : > { %4560 = vmatpush3.msra.mxu0 %v5590_v57  ;;  %4567 = vmatpush3.msra.mxu1 %v5590_v57 }
 0x2d5   : > { %4562 = vmatmul.mubr.msk.f32.vlgmr.msra.gmra.mxu0 %vm649_vm0, %v5164_v3  ;;  %4569 = vmatmul.mubr.msk.f32.vlgmr.msra.gmra.mxu1 %vm649_vm0, %v5188_v9  ;;  %v2052_v3 = vld [vmem:[%s6444_s5 + $0x68] sm:$0xff]  ;;  %v4088_v9 = vld [vmem:[%s6444_s5 + $0xe0] sm:$0xff] }
 0x2d6   : > { %4571 = vmatprep.subr.mxu0 %v4091_v17  ;;  %4606 = vmatprep.subr.mxu1 %v2054_v18 }
 0x2d7   : > { %4572 = vmatpush3.msra.mxu0 %v4091_v17  ;;  %4607 = vmatpush3.msra.mxu1 %v2054_v18  ;;  %v4125_v17 = vld [vmem:[%s6446_s7 + $0xc8] sm:$0xff]  ;;  %v4124_v18 = vld [vmem:[%s6446_s7 + $0xc0] sm:$0xff] }
 0x2d8   : > { %4573 = vmatprep.subr.mxu0 %v4090_v19  ;;  %4608 = vmatprep.subr.mxu1 %v2053_v20 }
 0x2d9   : > { %4574 = vmatpush3.msra.mxu0 %v4090_v19  ;;  %4609 = vmatpush3.msra.mxu1 %v2053_v20  ;;  %v4123_v19 = vld [vmem:[%s6446_s7 + $0xb8] sm:$0xff]  ;;  %v4122_v20 = vld [vmem:[%s6446_s7 + $0xb0] sm:$0xff] }
 0x2da   : > { %4575 = vmatprep.subr.mxu0 %v4089_v21  ;;  %4610 = vmatprep.subr.mxu1 %v2052_v3 }
 0x2db   : > { %4576 = vmatpush3.msra.mxu0 %v4089_v21  ;;  %4611 = vmatpush3.msra.mxu1 %v2052_v3  ;;  %v4121_v21 = vld [vmem:[%s6446_s7 + $0xa8] sm:$0xff] }
 0x2dc   : > { %4577 = vmatprep.subr.mxu0 %v4088_v9  ;;  %4612 = vmatprep.subr.mxu1 %v2051_v22 }
 0x2dd   : > { %4578 = vmatpush3.msra.mxu0 %v4088_v9  ;;  %4613 = vmatpush3.msra.mxu1 %v2051_v22 }
 0x2de   : > { %4579 = vmatprep.subr.mxu0 %v4087_v23  ;;  %4614 = vmatprep.subr.mxu1 %v2050_v24 }
 0x2df   : > { %4580 = vmatpush3.msra.mxu0 %v4087_v23  ;;  %4615 = vmatpush3.msra.mxu1 %v2050_v24 }
 0x2e0   : > { %4581 = vmatprep.subr.mxu0 %v4086_v0  ;;  %4616 = vmatprep.subr.mxu1 %v2049_v28 }
 0x2e1   : > { %4582 = vmatpush3.msra.mxu0 %v4086_v0  ;;  %4617 = vmatpush3.msra.mxu1 %v2049_v28 }
 0x2e2   : > { %4583 = vmatprep.subr.mxu0 %v4085_v30  ;;  %4618 = vmatprep.subr.mxu1 %v2048_v1 }
 0x2e3   : > { %4584 = vmatpush3.msra.mxu0 %v4085_v30  ;;  %4619 = vmatpush3.msra.mxu1 %v2048_v1  ;;  %v2467_v1 = vld [vmem:[%s6445_s6 + $0x8] sm:$0x3] }
 0x2e4   : > { %4585 = vmatprep.subr.mxu0 %v4084_v27  ;;  %4620 = vmatprep.subr.mxu1 %v2047_v31 }
 0x2e5   : > { %4586 = vmatpush3.msra.mxu0 %v4084_v27  ;;  %4621 = vmatpush3.msra.mxu1 %v2047_v31  ;;  %v4112_v27 = vld [vmem:[%s6445_s6 + $0x10] sm:$0xff]  ;;  %v4113_v31 = vld [vmem:[%s6445_s6 + $0x18] sm:$0x3] }
 0x2e6   : > { %4587 = vmatprep.subr.mxu0 %v4083_v32  ;;  %4622 = vmatprep.subr.mxu1 %v2046_v6 }
 0x2e7   : > { %4588 = vmatpush3.msra.mxu0 %v4083_v32  ;;  %4623 = vmatpush3.msra.mxu1 %v2046_v6  ;;  %v2650_v32 = vld [vmem:[%s6446_s7 + $0x78] sm:$0xff]  ;;  %v2649_v6 = vld [vmem:[%s6446_s7 + $0x70] sm:$0xff] }
 0x2e8   : > { %4589 = vmatprep.subr.mxu0 %v4082_v33  ;;  %4624 = vmatprep.subr.mxu1 %v2045_v34 }
 0x2e9   : > { %4590 = vmatpush3.msra.mxu0 %v4082_v33  ;;  %4625 = vmatpush3.msra.mxu1 %v2045_v34  ;;  %v2648_v33 = vld [vmem:[%s6446_s7 + $0x68] sm:$0xff]  ;;  %v2647_v34 = vld [vmem:[%s6446_s7 + $0x60] sm:$0xff] }
 0x2ea   : > { %4591 = vmatprep.subr.mxu0 %v4081_v35  ;;  %4626 = vmatprep.subr.mxu1 %v2044_v36 }
 0x2eb   : > { %4592 = vmatpush3.msra.mxu0 %v4081_v35  ;;  %4627 = vmatpush3.msra.mxu1 %v2044_v36  ;;  %v2646_v35 = vld [vmem:[%s6446_s7 + $0x58] sm:$0xff]  ;;  %v2645_v36 = vld [vmem:[%s6446_s7 + $0x50] sm:$0xff] }
 0x2ec   : > { %4593 = vmatprep.subr.mxu0 %v4080_v2  ;;  %4628 = vmatprep.subr.mxu1 %v2043_v37 }
 0x2ed   : > { %4594 = vmatpush3.msra.mxu0 %v4080_v2  ;;  %4629 = vmatpush3.msra.mxu1 %v2043_v37  ;;  %v2644_v2 = vld [vmem:[%s6446_s7 + $0x48] sm:$0xff]  ;;  %v2643_v37 = vld [vmem:[%s6446_s7 + $0x40] sm:$0xff] }
 0x2ee   : > { %4595 = vmatprep.subr.mxu0 %v4079_v38  ;;  %4630 = vmatprep.subr.mxu1 %v2042_v39 }
 0x2ef   : > { %4596 = vmatpush3.msra.mxu0 %v4079_v38  ;;  %4631 = vmatpush3.msra.mxu1 %v2042_v39  ;;  %v2642_v38 = vld [vmem:[%s6446_s7 + $0x38] sm:$0xff]  ;;  %v2641_v39 = vld [vmem:[%s6446_s7 + $0x30] sm:$0xff] }
 0x2f0   : > { %4597 = vmatprep.subr.mxu0 %v4078_v40  ;;  %4632 = vmatprep.subr.mxu1 %v2041_v41 }
 0x2f1   : > { %4598 = vmatpush3.msra.mxu0 %v4078_v40  ;;  %4633 = vmatpush3.msra.mxu1 %v2041_v41  ;;  %v2640_v40 = vld [vmem:[%s6446_s7 + $0x28] sm:$0xff]  ;;  %v2639_v41 = vld [vmem:[%s6446_s7 + $0x20] sm:$0xff] }
 0x2f2   : > { %4599 = vmatprep.subr.mxu0 %v4077_v42  ;;  %4634 = vmatprep.subr.mxu1 %v2040_v44 }
 0x2f3   : > { %4600 = vmatpush3.msra.mxu0 %v4077_v42  ;;  %4635 = vmatpush3.msra.mxu1 %v2040_v44  ;;  %v4120_v42 = vld [vmem:[%s6446_s7 + $0xa0] sm:$0xff]  ;;  %v4119_v44 = vld [vmem:[%s6446_s7 + $0x98] sm:$0xff] }
 0x2f4   : > { %4601 = vmatprep.subr.mxu0 %v4076_v43  ;;  %4636 = vmatprep.subr.mxu1 %v2039_v45 }
 0x2f5   : > { %4602 = vmatpush3.msra.mxu0 %v4076_v43  ;;  %4637 = vmatpush3.msra.mxu1 %v2039_v45  ;;  %v2638_v43 = vld [vmem:[%s6446_s7 + $0x18] sm:$0xff]  ;;  %v2637_v45 = vld [vmem:[%s6446_s7 + $0x10] sm:$0xff] }
 0x2f6   : > { %4641 = vmatprep.subr.mxu0 %v5588_v16  ;;  %4648 = vmatprep.subr.mxu1 %v4109_v46 }
 0x395   : > { %v4563_v47 = vpop.f32.mrf.mxu0  ;;  %v4570_v48 = vpop.f32.mrf.mxu1 }
 0x397   : > { %v2030_v49 = vpop.f32.mrf.mxu0  ;;  %v2121_v50 = vpop.f32.mrf.mxu1 }
 0x398   : > { %4603 = vmatprep.mubr.f32.mxu0 %v2121_v50  ;;  %4638 = vmatprep.mubr.f32.mxu1 %v2030_v49  ;;  %v2635_v49 = vld [vmem:[%s6446_s7] sm:$0xff] }
 0x399   : > { %4604 = vmatmul.mubr.f32.vlgmr.msra.gmra.mxu0 %v4570_v48  ;;  %4639 = vmatmul.mubr.f32.vlgmr.msra.gmra.mxu1 %v4563_v47  ;;  %v2636_v47 = vld [vmem:[%s6446_s7 + $0x8] sm:$0xff]  ;;  %v4116_v50 = vld [vmem:[%s6446_s7 + $0x80] sm:$0xff] }
 0x39a   : > { %4642 = vmatpush3.msra.mxu0 %v5588_v16  ;;  %4645 = vmatprep.mubr.msk.f32.mxu0 %vm649_vm0, %v5435_v26  ;;  %v4105_v26 = vld [vmem:[%s6444_s5 + $0x158] sm:$0xff]  ;;  %v4117_v48 = vld [vmem:[%s6446_s7 + $0x88] sm:$0xff] }
 0x39b   : > { %4643 = vmatprep.subr.mxu0 %v5590_v57  ;;  %4649 = vmatpush3.msra.mxu1 %v4109_v46  ;;  %v4127_v16 = vld [vmem:[%s6446_s7 + $0xd8] sm:$0xff]  ;;  %v4118_v46 = vld [vmem:[%s6446_s7 + $0x90] sm:$0xff] }
 0x39c   : > { %4644 = vmatpush3.msra.mxu0 %v5590_v57  ;;  %4650 = vmatprep.subr.mxu1 %v4108_v52  ;;  %v4126_v57 = vld [vmem:[%s6446_s7 + $0xd0] sm:$0xff] }
 0x39d   : > { %4646 = vmatmul.mubr.msk.f32.vlgmr.msra.gmra.mxu0 %vm649_vm0, %v5442_v29  ;;  %4651 = vmatpush3.msra.mxu1 %v4108_v52  ;;  %v4103_v29 = vld [vmem:[%s6444_s5 + $0x148] sm:$0xff] }
 0x39e   : > { %4652 = vmatprep.subr.mxu1 %v4107_v54  ;;  %4687 = vmatprep.mubr.msk.f32.mxu0 %vm649_vm0, %v2466_v12  ;;  %v2856_v12 = vld [vmem:[%s6448_s9 + $0xc8] sm:$0xff] }
 0x39f   : > { %4653 = vmatpush3.msra.mxu1 %v4107_v54 }
 0x3a0   : > { %4654 = vmatprep.subr.mxu1 %v4106_v56 }
 0x3a1   : > { %4655 = vmatpush3.msra.mxu1 %v4106_v56 }
 0x3a2   : > { %4656 = vmatprep.subr.mxu1 %v4105_v26 }
 0x3a3   : > { %4657 = vmatpush3.msra.mxu1 %v4105_v26 }
 0x3a4   : > { %4658 = vmatprep.subr.mxu1 %v4104_v58 }
 0x3a5   : > { %4659 = vmatpush3.msra.mxu1 %v4104_v58 }
 0x3a6   : > { %4660 = vmatprep.subr.mxu1 %v4103_v29 }
 0x3a7   : > { %4661 = vmatpush3.msra.mxu1 %v4103_v29 }
 0x3a8   : > { %4662 = vmatprep.subr.mxu1 %v4102_v59 }
 0x3a9   : > { %4663 = vmatpush3.msra.mxu1 %v4102_v59  ;;  %v2877_v59 = vld [vmem:[%s6448_s9 + $0x170] sm:$0xff] }
 0x3aa   : > { %4664 = vmatprep.subr.mxu1 %v4101_v60 }
 0x3ab   : > { %4665 = vmatpush3.msra.mxu1 %v4101_v60  ;;  %v2876_v60 = vld [vmem:[%s6448_s9 + $0x168] sm:$0xff] }
 0x3ac   : > { %4666 = vmatprep.subr.mxu1 %v4100_v61 }
 0x3ad   : > { %4667 = vmatpush3.msra.mxu1 %v4100_v61  ;;  %v2872_v61 = vld [vmem:[%s6448_s9 + $0x148] sm:$0xff] }
 0x3ae   : > { %4668 = vmatprep.subr.mxu1 %v4099_v62 }
 0x3af   : > { %4669 = vmatpush3.msra.mxu1 %v4099_v62  ;;  %v2880_v62 = vld [vmem:[%s6448_s9 + $0x188] sm:$0xff] }
 0x3b0   : > { %4670 = vmatprep.subr.mxu1 %v4098_v63 }
 0x3b1   : > { %4671 = vmatpush3.msra.mxu1 %v4098_v63  ;;  %v2871_v63 = vld [vmem:[%s6448_s9 + $0x140] sm:$0xff] }
 0x3b2   : > { %4672 = vmatprep.subr.mxu1 %v4097_v4 }
 0x3b3   : > { %4673 = vmatpush3.msra.mxu1 %v4097_v4  ;;  %v2867_v4 = vld [vmem:[%s6448_s9 + $0x120] sm:$0xff] }
 0x3b4   : > { %4674 = vmatprep.subr.mxu1 %v4096_v51 }
 0x3b5   : > { %4675 = vmatpush3.msra.mxu1 %v4096_v51  ;;  %v2875_v51 = vld [vmem:[%s6448_s9 + $0x160] sm:$0xff] }
 0x3b6   : > { %4676 = vmatprep.subr.mxu1 %v4095_v5 }
 0x3b7   : > { %4677 = vmatpush3.msra.mxu1 %v4095_v5  ;;  %v2866_v5 = vld [vmem:[%s6448_s9 + $0x118] sm:$0xff] }
 0x3b8   : > { %4678 = vmatprep.subr.mxu1 %v4094_v55 }
 0x3b9   : > { %4679 = vmatpush3.msra.mxu1 %v4094_v55  ;;  %v2862_v55 = vld [vmem:[%s6448_s9 + $0xf8] sm:$0xff] }
 0x3ba   : > { %4732 = vmatprep.subr.mxu1 %v4131_v13 }
 0x459   : > { %v4605_v7 = vpop.f32.mrf.mxu0  ;;  %v4640_v3 = vpop.f32.mrf.mxu1 }
 0x45a   : > { %v2294_v22 = vadd.f32 %v4640_v3, %v4605_v7  ;;  %v2870_v7 = vld [vmem:[%s6448_s9 + $0x138] sm:$0xff]  ;;  %v2836_v3 = vld [vmem:[%s6448_s9 + $0x28] sm:$0xff] }
 0x45b   : > { %v2213_v8 = vpop.f32.mrf.mxu0  ;;  %v2288_v9 = vpop.f32.mrf.mxu1 }
 0x45c   : > { %v2289_v24 = vadd.f32 %v2288_v9, %v2213_v8  ;;  %v2861_v8 = vld [vmem:[%s6448_s9 + $0xf0] sm:$0xff]  ;;  %v2832_v9 = vld [vmem:[%s6448_s9 + $0x8] sm:$0xff] }
 0x45d   : > { %v4647_v10 = vpop.f32.mrf.mxu0 }
 0x45f   : > { %v2363_v11 = vpop.f32.mrf.mxu0 }
 0x460   : > { %4680 = vmatprep.mubr.f32.mxu1 %v2363_v11  ;;  %v2865_v11 = vld [vmem:[%s6448_s9 + $0x110] sm:$0xff] }
 0x461   : > { %4681 = vmatmul.mubr.f32.vlgmr.msra.gmra.mxu1 %v4647_v10  ;;  %v2857_v10 = vld [vmem:[%s6448_s9 + $0xd0] sm:$0xff] }
 0x462   : > { %4733 = vmatpush3.msra.mxu1 %v4131_v13  ;;  %v2852_v13 = vld [vmem:[%s6448_s9 + $0xa8] sm:$0xff] }
 0x463   : > { %4734 = vmatprep.subr.mxu1 %v4130_v14 }
 0x464   : > { %4735 = vmatpush3.msra.mxu1 %v4130_v14  ;;  %v2860_v14 = vld [vmem:[%s6448_s9 + $0xe8] sm:$0xff] }
 0x465   : > { %4736 = vmatprep.subr.mxu1 %v4129_v15 }
 0x466   : > { %4737 = vmatpush3.msra.mxu1 %v4129_v15  ;;  %v2851_v15 = vld [vmem:[%s6448_s9 + $0xa0] sm:$0xff] }
 0x467   : > { %4738 = vmatprep.subr.mxu1 %v4128_v53 }
 0x468   : > { %4739 = vmatpush3.msra.mxu1 %v4128_v53  ;;  %v2847_v53 = vld [vmem:[%s6448_s9 + $0x80] sm:$0xff] }
 0x469   : > { %4740 = vmatprep.subr.mxu1 %v4127_v16 }
 0x46a   : > { %4741 = vmatpush3.msra.mxu1 %v4127_v16  ;;  %v2855_v16 = vld [vmem:[%s6448_s9 + $0xc0] sm:$0xff] }
 0x46b   : > { %4742 = vmatprep.subr.mxu1 %v4126_v57 }
 0x46c   : > { %4743 = vmatpush3.msra.mxu1 %v4126_v57  ;;  %v2846_v57 = vld [vmem:[%s6448_s9 + $0x78] sm:$0xff] }
 0x46d   : > { %4744 = vmatprep.subr.mxu1 %v4125_v17 }
 0x46e   : > { %4745 = vmatpush3.msra.mxu1 %v4125_v17  ;;  %v2842_v17 = vld [vmem:[%s6448_s9 + $0x58] sm:$0xff] }
 0x46f   : > { %4746 = vmatprep.subr.mxu1 %v4124_v18 }
 0x470   : > { %4747 = vmatpush3.msra.mxu1 %v4124_v18  ;;  %v2850_v18 = vld [vmem:[%s6448_s9 + $0x98] sm:$0xff] }
 0x471   : > { %4748 = vmatprep.subr.mxu1 %v4123_v19 }
 0x472   : > { %4749 = vmatpush3.msra.mxu1 %v4123_v19  ;;  %v2841_v19 = vld [vmem:[%s6448_s9 + $0x50] sm:$0xff] }
 0x473   : > { %4750 = vmatprep.subr.mxu1 %v4122_v20 }
 0x474   : > { %4751 = vmatpush3.msra.mxu1 %v4122_v20  ;;  %v2837_v20 = vld [vmem:[%s6448_s9 + $0x30] sm:$0xff] }
 0x475   : > { %4752 = vmatprep.subr.mxu1 %v4121_v21 }
 0x476   : > { %4753 = vmatpush3.msra.mxu1 %v4121_v21  ;;  %v2845_v21 = vld [vmem:[%s6448_s9 + $0x70] sm:$0xff] }
 0x477   : > { %4754 = vmatprep.subr.mxu1 %v4120_v42 }
 0x478   : > { %4755 = vmatpush3.msra.mxu1 %v4120_v42  ;;  %v2863_v42 = vld [vmem:[%s6448_s9 + $0x100] sm:$0xff] }
 0x479   : > { %4756 = vmatprep.subr.mxu1 %v4119_v44 }
 0x47a   : > { %4757 = vmatpush3.msra.mxu1 %v4119_v44  ;;  %v2858_v44 = vld [vmem:[%s6448_s9 + $0xd8] sm:$0xff] }
 0x47b   : > { %4758 = vmatprep.subr.mxu1 %v4118_v46 }
 0x47c   : > { %4759 = vmatpush3.msra.mxu1 %v4118_v46  ;;  %v2853_v46 = vld [vmem:[%s6448_s9 + $0xb0] sm:$0xff] }
 0x47d   : > { %4760 = vmatprep.subr.mxu1 %v4117_v48 }
 0x47e   : > { %4761 = vmatpush3.msra.mxu1 %v4117_v48  ;;  %v2848_v48 = vld [vmem:[%s6448_s9 + $0x88] sm:$0xff] }
 0x47f   : > { %4762 = vmatprep.subr.mxu1 %v4116_v50 }
 0x480   : > { %4763 = vmatpush3.msra.mxu1 %v4116_v50  ;;  %v2843_v50 = vld [vmem:[%s6448_s9 + $0x60] sm:$0xff] }
 0x481   : > { %4767 = vmatprep.subr.mxu1 %v2880_v62 }
 0x521   : > { %v4682_v23 = vpop.f32.mrf.mxu1 }
 0x522   : > { %v2465_v0 = vadd.f32 %v4682_v23, %v2294_v22  ;;  %v2840_v22 = vld [vmem:[%s6448_s9 + $0x48] sm:$0xff]  ;;  %v2831_v23 = vld [vmem:[%s6448_s9] sm:$0xff] }
 0x523   : > { %v2455_v28 = vpop.f32.mrf.mxu1 }
 0x524   : > { %v2464_v30 = vadd.f32 %v2455_v28, %v2289_v24  ;;  %4683 = vmatprep.subr.mxu0 %v2465_v0  ;;  %v2879_v24 = vld [vmem:[%s6448_s9 + $0x180] sm:$0xff] }
 0x525   : > { %4684 = vmatpush3.msra.mxu0 %v2465_v0 }
 0x526   : > { %4685 = vmatprep.subr.mxu0 %v2464_v30 }
 0x527   : > { %4686 = vmatpush3.msra.mxu0 %v2464_v30 }
 0x528   : > { %4688 = vmatmul.mubr.msk.f32.vlgmr.msra.gmra.mxu0 %vm649_vm0, %v2467_v1  ;;  %4690 = vmatprep.subr.mxu0 %v2465_v0 }
 0x529   : > { %4691 = vmatpush3.msra.mxu0 %v2465_v0  ;;  %4694 = vmatprep.mubr.msk.f32.mxu0 %vm649_vm0, %v4112_v27  ;;  %v2835_v0 = vld [vmem:[%s6448_s9 + $0x20] sm:$0xff] }
 0x52a   : > { %4692 = vmatprep.subr.mxu0 %v2464_v30  ;;  %v4132_v27 = vld [vmem:[%s6447_s8] ss:$0 sm:$0xff] }
 0x52b   : > { %4693 = vmatpush3.msra.mxu0 %v2464_v30 }
 0x52c   : > { %4695 = vmatmul.mubr.msk.f32.vlgmr.msra.gmra.mxu0 %vm649_vm0, %v4113_v31  ;;  %4697 = vmatprep.subr.mxu0 %v2650_v32 }
 0x52d   : > { %4698 = vmatpush3.msra.mxu0 %v2650_v32 }
 0x52e   : > { %4699 = vmatprep.subr.mxu0 %v2649_v6 }
 0x52f   : > { %4700 = vmatpush3.msra.mxu0 %v2649_v6 }
 0x530   : > { %4701 = vmatprep.subr.mxu0 %v2648_v33 }
 0x531   : > { %4702 = vmatpush3.msra.mxu0 %v2648_v33 }
 0x532   : > { %4703 = vmatprep.subr.mxu0 %v2647_v34 }
 0x533   : > { %4704 = vmatpush3.msra.mxu0 %v2647_v34 }
 0x534   : > { %4705 = vmatprep.subr.mxu0 %v2646_v35 }
 0x535   : > { %4706 = vmatpush3.msra.mxu0 %v2646_v35  ;;  %v2878_v35 = vld [vmem:[%s6448_s9 + $0x178] sm:$0xff] }
 0x536   : > { %4707 = vmatprep.subr.mxu0 %v2645_v36 }
 0x537   : > { %4708 = vmatpush3.msra.mxu0 %v2645_v36 }
 0x538   : > { %4709 = vmatprep.subr.mxu0 %v2644_v2 }
 0x539   : > { %4710 = vmatpush3.msra.mxu0 %v2644_v2  ;;  %v2874_v2 = vld [vmem:[%s6448_s9 + $0x158] sm:$0xff] }
 0x53a   : > { %4711 = vmatprep.subr.mxu0 %v2643_v37 }
 0x53b   : > { %4712 = vmatpush3.msra.mxu0 %v2643_v37 }
 0x53c   : > { %4713 = vmatprep.subr.mxu0 %v2642_v38 }
 0x53d   : > { %4714 = vmatpush3.msra.mxu0 %v2642_v38  ;;  %v2873_v38 = vld [vmem:[%s6448_s9 + $0x150] sm:$0xff] }
 0x53e   : > { %4715 = vmatprep.subr.mxu0 %v2641_v39 }
 0x53f   : > { %4716 = vmatpush3.msra.mxu0 %v2641_v39  ;;  %v2869_v39 = vld [vmem:[%s6448_s9 + $0x130] sm:$0xff] }
 0x540   : > { %4717 = vmatprep.subr.mxu0 %v2640_v40 }
 0x541   : > { %4718 = vmatpush3.msra.mxu0 %v2640_v40  ;;  %v2868_v40 = vld [vmem:[%s6448_s9 + $0x128] sm:$0xff] }
 0x542   : > { %4719 = vmatprep.subr.mxu0 %v2639_v41 }
 0x543   : > { %4720 = vmatpush3.msra.mxu0 %v2639_v41  ;;  %v2864_v41 = vld [vmem:[%s6448_s9 + $0x108] sm:$0xff] }
 0x544   : > { %4721 = vmatprep.subr.mxu0 %v2638_v43 }
 0x545   : > { %4722 = vmatpush3.msra.mxu0 %v2638_v43  ;;  %v2859_v43 = vld [vmem:[%s6448_s9 + $0xe0] sm:$0xff] }
 0x546   : > { %4723 = vmatprep.subr.mxu0 %v2637_v45 }
 0x547   : > { %4724 = vmatpush3.msra.mxu0 %v2637_v45  ;;  %v2854_v45 = vld [vmem:[%s6448_s9 + $0xb8] sm:$0xff] }
 0x548   : > { %4725 = vmatprep.subr.mxu0 %v2636_v47 }
 0x549   : > { %4726 = vmatpush3.msra.mxu0 %v2636_v47  ;;  %v2849_v47 = vld [vmem:[%s6448_s9 + $0x90] sm:$0xff] }
 0x54a   : > { %4727 = vmatprep.subr.mxu0 %v2635_v49 }
 0x54b   : > { %4728 = vmatpush3.msra.mxu0 %v2635_v49  ;;  %v2844_v49 = vld [vmem:[%s6448_s9 + $0x68] sm:$0xff] }
 0x54c   : > { %2900 = vmatprep.subr.mxu0 %v2877_v59  ;;  %v3208_v59 = vld [vmem:[%s6450_s11 + $0xf0] sm:$0xff] }
 0x5e8   : > { %v4689_v52 = vpop.f32.mrf.mxu0 }
 0x5ea   : > { %v2540_v54 = vpop.f32.mrf.mxu0 }
 0x5ec   : > { %v4696_v56 = vpop.f32.mrf.mxu0 }
 0x5ed   : > { %v2634_v29 = vmax.f32 %v4689_v52, %v4696_v56  ;;  %v2839_v52 = vld [vmem:[%s6448_s9 + $0x40] sm:$0xff]  ;;  %v2834_v56 = vld [vmem:[%s6448_s9 + $0x18] sm:$0xff] }
 0x5ee   : > { %v2624_v26 = vpop.f32.mrf.mxu0 }
 0x5ef   : > { %v2633_v58 = vmax.f32 %v2540_v54, %v2624_v26  ;;  %v2838_v54 = vld [vmem:[%s6448_s9 + $0x38] sm:$0xff]  ;;  %v2833_v26 = vld [vmem:[%s6448_s9 + $0x10] sm:$0xff] }
 0x5f1   : > { %4729 = vmatprep.mubr.f32.mxu0 %v2633_v58  ;;  %4764 = vmatprep.mubr.f32.mxu1 %v2633_v58  ;;  %v3209_v58 = vld [vmem:[%s6450_s11 + $0xf8] sm:$0xff] }
 0x5f2   : > { %4730 = vmatmul.mubr.f32.vlgmr.msra.gmra.mxu0 %v2634_v29  ;;  %4765 = vmatmul.mubr.f32.vlgmr.msra.gmra.mxu1 %v2634_v29  ;;  %v3193_v29 = vld [vmem:[%s6450_s11 + $0x78] sm:$0xff] }
 0x5f3   : > { %2952 = vmatprep.mubr.f32.mxu0 %v4996_v25  ;;  %2901 = vmatpush1.msra.mxu0 %v2876_v60  ;;  %v3192_v60 = vld [vmem:[%s6450_s11 + $0x70] sm:$0xff] }
 0x5f4   : > { %2902 = vmatprep.subr.mxu0 %v2872_v61  ;;  %4768 = vmatpush3.msra.mxu1 %v2880_v62  ;;  %v3207_v61 = vld [vmem:[%s6450_s11 + $0xe8] sm:$0xff] }
 0x5f5   : > { %2903 = vmatpush1.msra.mxu0 %v2871_v63  ;;  %4769 = vmatprep.subr.mxu1 %v2875_v51  ;;  %v3191_v62 = vld [vmem:[%s6450_s11 + $0x68] sm:$0xff]  ;;  %v3206_v63 = vld [vmem:[%s6450_s11 + $0xe0] sm:$0xff] }
 0x5f6   : > { %2904 = vmatprep.subr.mxu0 %v2867_v4  ;;  %4770 = vmatpush3.msra.mxu1 %v2875_v51  ;;  %v3190_v4 = vld [vmem:[%s6450_s11 + $0x60] sm:$0xff]  ;;  %v3205_v51 = vld [vmem:[%s6450_s11 + $0xd8] sm:$0xff] }
 0x5f7   : > { %2905 = vmatpush1.msra.mxu0 %v2866_v5  ;;  %4771 = vmatprep.subr.mxu1 %v2870_v7  ;;  %v3189_v5 = vld [vmem:[%s6450_s11 + $0x58] sm:$0xff] }
 0x5f8   : > { %2906 = vmatprep.subr.mxu0 %v2862_v55  ;;  %4772 = vmatpush3.msra.mxu1 %v2870_v7  ;;  %v3204_v55 = vld [vmem:[%s6450_s11 + $0xd0] sm:$0xff] }
 0x5f9   : > { %2907 = vmatpush1.msra.mxu0 %v2861_v8  ;;  %4773 = vmatprep.subr.mxu1 %v2865_v11  ;;  %v3188_v7 = vld [vmem:[%s6450_s11 + $0x50] sm:$0xff]  ;;  %v3203_v8 = vld [vmem:[%s6450_s11 + $0xc8] sm:$0xff] }
 0x5fa   : > { %2908 = vmatprep.subr.mxu0 %v2857_v10  ;;  %4774 = vmatpush3.msra.mxu1 %v2865_v11  ;;  %v3187_v10 = vld [vmem:[%s6450_s11 + $0x48] sm:$0xff]  ;;  %v3202_v11 = vld [vmem:[%s6450_s11 + $0xc0] sm:$0xff] }
 0x5fb   : > { %2909 = vmatpush1.msra.mxu0 %v2856_v12  ;;  %4775 = vmatprep.subr.mxu1 %v2860_v14  ;;  %v3186_v12 = vld [vmem:[%s6450_s11 + $0x40] sm:$0xff] }
 0x5fc   : > { %2910 = vmatprep.subr.mxu0 %v2852_v13  ;;  %4776 = vmatpush3.msra.mxu1 %v2860_v14  ;;  %v3201_v13 = vld [vmem:[%s6450_s11 + $0xb8] sm:$0xff] }
 0x5fd   : > { %2911 = vmatpush1.msra.mxu0 %v2851_v15  ;;  %4777 = vmatprep.subr.mxu1 %v2855_v16  ;;  %v3185_v14 = vld [vmem:[%s6450_s11 + $0x38] sm:$0xff]  ;;  %v3200_v15 = vld [vmem:[%s6450_s11 + $0xb0] sm:$0xff] }
 0x5fe   : > { %2912 = vmatprep.subr.mxu0 %v2847_v53  ;;  %4778 = vmatpush3.msra.mxu1 %v2855_v16  ;;  %v3184_v53 = vld [vmem:[%s6450_s11 + $0x30] sm:$0xff]  ;;  %v3199_v16 = vld [vmem:[%s6450_s11 + $0xa8] sm:$0xff] }
 0x5ff   : > { %2913 = vmatpush1.msra.mxu0 %v2846_v57  ;;  %4779 = vmatprep.subr.mxu1 %v2850_v18  ;;  %v3241_v57 = vld [vmem:[%s6450_s11 + $0x1f8] sm:$0xff] }
 0x600   : > { %2914 = vmatprep.subr.mxu0 %v2842_v17  ;;  %4780 = vmatpush3.msra.mxu1 %v2850_v18  ;;  %v3183_v17 = vld [vmem:[%s6450_s11 + $0x28] sm:$0xff]  ;;  %v3225_v18 = vld [vmem:[%s6450_s11 + $0x178] sm:$0xff] }
 0x601   : > { %2915 = vmatpush1.msra.mxu0 %v2841_v19  ;;  %4781 = vmatprep.subr.mxu1 %v2845_v21  ;;  %v3198_v19 = vld [vmem:[%s6450_s11 + $0xa0] sm:$0xff] }
 0x602   : > { %2916 = vmatprep.subr.mxu0 %v2837_v20  ;;  %4782 = vmatpush3.msra.mxu1 %v2845_v21  ;;  %v3240_v20 = vld [vmem:[%s6450_s11 + $0x1f0] sm:$0xff]  ;;  %v3182_v21 = vld [vmem:[%s6450_s11 + $0x20] sm:$0xff] }
 0x603   : > { %2917 = vmatpush1.msra.mxu0 %v2836_v3  ;;  %4783 = vmatprep.subr.mxu1 %v2840_v22  ;;  %v3224_v3 = vld [vmem:[%s6450_s11 + $0x170] sm:$0xff] }
 0x604   : > { %2918 = vmatprep.subr.mxu0 %v2832_v9  ;;  %4784 = vmatpush3.msra.mxu1 %v2840_v22  ;;  %v3197_v9 = vld [vmem:[%s6450_s11 + $0x98] sm:$0xff]  ;;  %v3239_v22 = vld [vmem:[%s6450_s11 + $0x1e8] sm:$0xff] }
 0x605   : > { %2919 = vmatpush1.msra.mxu0 %v2831_v23  ;;  %4785 = vmatprep.subr.mxu1 %v2835_v0  ;;  %v3181_v23 = vld [vmem:[%s6450_s11 + $0x18] sm:$0xff] }
 0x606   : > { %2977 = vmatprep.subr.mxu0 %v2879_v24  ;;  %4786 = vmatpush3.msra.mxu1 %v2835_v0  ;;  %v3223_v24 = vld [vmem:[%s6450_s11 + $0x168] sm:$0xff]  ;;  %v3196_v0 = vld [vmem:[%s6450_s11 + $0x90] sm:$0xff] }
 0x607   : > { %4369 = vmatprep.subr.mxu1 %v3241_v57 }
 0x6b2   : > { %v4731_v28 = vpop.f32.mrf.mxu0  ;;  %v4766_v30 = vpop.f32.mrf.mxu1 }
 0x6b3   : > { %v2819_v1 = vmax.f32 %v4731_v28, %v4766_v30  ;;  %v3238_v28 = vld [vmem:[%s6450_s11 + $0x1e0] sm:$0xff]  ;;  %v3180_v30 = vld [vmem:[%s6450_s11 + $0x10] sm:$0xff] }
 0x6b4   : > { %v2717_v31 = vpop.f32.mrf.mxu0  ;;  %v2809_v32 = vpop.f32.mrf.mxu1 }
 0x6b5   : > { %v2818_v6 = vmax.f32 %v2717_v31, %v2809_v32  ;;  %v2828_v33 = vadd.f32 %v4132_v27, %v2819_v1  ;;  %v3222_v1 = vld [vmem:[%s6450_s11 + $0x160] sm:$0xff]  ;;  %v3237_v31 = vld [vmem:[%s6450_s11 + $0x1d8] sm:$0xff]  ;;  %v3179_v32 = vld [vmem:[%s6450_s11 + $0x8] sm:$0xff] }
 0x6b7   : > { %v2827_v34 = vadd.f32 %v4132_v27, %v2818_v6  ;;  %v3195_v27 = vld [vmem:[%s6450_s11 + $0x88] sm:$0xff]  ;;  %v3221_v6 = vld [vmem:[%s6450_s11 + $0x158] sm:$0xff] }
 0x6b9   : > { %4914 = vtanh.f32 %v2827_v34  ;;  %v3236_v34 = vld [vmem:[%s6450_s11 + $0x1d0] sm:$0xff] }
 0x6ba   : > { %4916 = vtanh.f32 %v2828_v33  ;;  %v3194_v33 = vld [vmem:[%s6450_s11 + $0x80] sm:$0xff] }
 0x6c6   : > { %v4915_v36 = vpop.eup %4914 }
 0x6c7   : > { %v4917_v37 = vpop.eup %4916  ;;  %4133 = vmatmul.mubr.msk.f32.vlgmr.msra.gmra.mxu0 %vm2881_vm2, %v4915_v36  ;;  %4787 = vmatprep.mubr.msk.f32.mxu1 %vm2881_vm2, %v4915_v36 }
 0x6c8   : > { %2978 = vmatpush1.msra.mxu0 %v2878_v35  ;;  %4788 = vmatmul.mubr.msk.f32.vlgmr.msra.gmra.mxu1 %vm2881_vm2, %v4917_v37  ;;  %v3178_v35 = vld [vmem:[%s6450_s11] sm:$0xff] }
 0x6c9   : > { %2979 = vmatprep.subr.mxu0 %v2874_v2  ;;  %2958 = vmatprep.mubr.f32.mxu0 %v4996_v25  ;;  %v3235_v2 = vld [vmem:[%s6450_s11 + $0x1c8] sm:$0xff] }
 0x6ca   : > { %2980 = vmatpush1.msra.mxu0 %v2873_v38  ;;  %4370 = vmatpush3.msra.mxu1 %v3225_v18  ;;  %v3234_v38 = vld [vmem:[%s6450_s11 + $0x1c0] sm:$0xff] }
 0x6cb   : > { %2981 = vmatprep.subr.mxu0 %v2869_v39  ;;  %4134 = vmatmul.mubr.msk.f32.gmra.mxu0 %vm2881_vm2, %v4917_v37  ;;  %v3218_v39 = vld [vmem:[%s6450_s11 + $0x140] sm:$0xff] }
 0x6cc   : > { %2982 = vmatpush1.msra.mxu0 %v2868_v40  ;;  %3029 = vmatprep.mubr.f32.mxu0 %v4996_v25  ;;  %v3233_v40 = vld [vmem:[%s6450_s11 + $0x1b8] sm:$0xff] }
 0x6cd   : > { %2983 = vmatprep.subr.mxu0 %v2864_v41  ;;  %4371 = vmatprep.subr.mxu1 %v3240_v20  ;;  %v3217_v41 = vld [vmem:[%s6450_s11 + $0x138] sm:$0xff] }
 0x6ce   : > { %2984 = vmatpush1.msra.mxu0 %v2863_v42  ;;  %4372 = vmatpush3.msra.mxu1 %v3224_v3  ;;  %v3232_v42 = vld [vmem:[%s6450_s11 + $0x1b0] sm:$0xff] }
 0x6cf   : > { %2985 = vmatprep.subr.mxu0 %v2859_v43  ;;  %4373 = vmatprep.subr.mxu1 %v3239_v22  ;;  %v3216_v43 = vld [vmem:[%s6450_s11 + $0x130] sm:$0xff]  ;;  %v3126_v22 = vld [vmem:[%s6449_s10 + $0x48] sm:$0x3] }
 0x6d0   : > { %2986 = vmatpush1.msra.mxu0 %v2858_v44  ;;  %4374 = vmatpush3.msra.mxu1 %v3223_v24  ;;  %v3231_v44 = vld [vmem:[%s6450_s11 + $0x1a8] sm:$0xff]  ;;  %v3124_v24 = vld [vmem:[%s6449_s10 + $0x38] sm:$0x3] }
 0x6d1   : > { %2987 = vmatprep.subr.mxu0 %v2854_v45  ;;  %4375 = vmatprep.subr.mxu1 %v3238_v28  ;;  %v3215_v45 = vld [vmem:[%s6450_s11 + $0x128] sm:$0xff] }
 0x6d2   : > { %2988 = vmatpush1.msra.mxu0 %v2853_v46  ;;  %4376 = vmatpush3.msra.mxu1 %v3222_v1  ;;  %v3230_v46 = vld [vmem:[%s6450_s11 + $0x1a0] sm:$0xff]  ;;  %v3257_v1 = vld [vmem:[%s6450_s11 + $0x278] sm:$0xff] }
 0x6d3   : > { %2989 = vmatprep.subr.mxu0 %v2849_v47  ;;  %4377 = vmatprep.subr.mxu1 %v3237_v31  ;;  %v3214_v47 = vld [vmem:[%s6450_s11 + $0x120] sm:$0xff] }
 0x6d4   : > { %2990 = vmatpush1.msra.mxu0 %v2848_v48  ;;  %4378 = vmatpush3.msra.mxu1 %v3221_v6  ;;  %v3229_v48 = vld [vmem:[%s6450_s11 + $0x198] sm:$0xff] }
 0x6d5   : > { %2991 = vmatprep.subr.mxu0 %v2844_v49  ;;  %4379 = vmatprep.subr.mxu1 %v3236_v34  ;;  %v3213_v49 = vld [vmem:[%s6450_s11 + $0x118] sm:$0xff] }
 0x6d6   : > { %2992 = vmatpush1.msra.mxu0 %v2843_v50  ;;  %v3228_v50 = vld [vmem:[%s6450_s11 + $0x190] sm:$0xff]  ;;  %v3120_v34 = vld [vmem:[%s6449_s10 + $0x18] sm:$0xff] }
 0x6d7   : > { %2993 = vmatprep.subr.mxu0 %v2839_v52  ;;  %v3212_v52 = vld [vmem:[%s6450_s11 + $0x110] sm:$0xff] }
 0x6d8   : > { %2994 = vmatpush1.msra.mxu0 %v2838_v54  ;;  %v3227_v54 = vld [vmem:[%s6450_s11 + $0x188] sm:$0xff] }
 0x6d9   : > { %2995 = vmatprep.subr.mxu0 %v2834_v56  ;;  %v3211_v56 = vld [vmem:[%s6450_s11 + $0x108] sm:$0xff] }
 0x6da   : > { %2996 = vmatpush1.msra.mxu0 %v2833_v26  ;;  %v3226_v26 = vld [vmem:[%s6450_s11 + $0x180] sm:$0xff] }
 0x6db   : > { %4135 = vmatmul.mubr.msk.f32.vlgmr.msra.gmra.mxu0 %vm2881_vm2, %v4915_v36  ;;  %4334 = vmatprep.subr.mxu0 %v3209_v58  ;;  %v3220_v36 = vld [vmem:[%s6450_s11 + $0x150] sm:$0xff]  ;;  %v3210_v58 = vld [vmem:[%s6450_s11 + $0x100] sm:$0xff] }
 0x6dc   : > { %3035 = vmatprep.mubr.f32.mxu0 %v4996_v25  ;;  %4335 = vmatpush3.msra.mxu0 %v3193_v29 }
 0x6dd   : > { %4336 = vmatprep.subr.mxu0 %v3208_v59  ;;  %4380 = vmatpush3.msra.mxu1 %v3220_v36  ;;  %v3256_v36 = vld [vmem:[%s6450_s11 + $0x270] sm:$0xff] }
 0x6de   : > { %4337 = vmatpush3.msra.mxu0 %v3192_v60  ;;  %4381 = vmatprep.subr.mxu1 %v3235_v2  ;;  %v3122_v60 = vld [vmem:[%s6449_s10 + $0x28] sm:$0x3] }
 0x6df   : > { %4136 = vmatmul.mubr.msk.f32.gmra.mxu0 %vm2881_vm2, %v4917_v37  ;;  %4338 = vmatprep.subr.mxu0 %v3207_v61  ;;  %v3219_v37 = vld [vmem:[%s6450_s11 + $0x148] sm:$0xff]  ;;  %v3117_v61 = vld [vmem:[%s6449_s10] sm:$0xff] }
 0x6e0   : > { %4339 = vmatpush3.msra.mxu0 %v3191_v62  ;;  %4382 = vmatpush3.msra.mxu1 %v3219_v37 }
 0x6e1   : > { %4340 = vmatprep.subr.mxu0 %v3206_v63  ;;  %4383 = vmatprep.subr.mxu1 %v3234_v38  ;;  %v3123_v63 = vld [vmem:[%s6449_s10 + $0x30] sm:$0x3] }
 0x6e2   : > { %4341 = vmatpush3.msra.mxu0 %v3190_v4  ;;  %4384 = vmatpush3.msra.mxu1 %v3218_v39  ;;  %v3118_v4 = vld [vmem:[%s6449_s10 + $0x8] sm:$0xff] }
 0x6e3   : > { %4342 = vmatprep.subr.mxu0 %v3205_v51  ;;  %4385 = vmatprep.subr.mxu1 %v3233_v40 }
 0x6e4   : > { %4343 = vmatpush3.msra.mxu0 %v3189_v5  ;;  %4386 = vmatpush3.msra.mxu1 %v3217_v41  ;;  %v3255_v41 = vld [vmem:[%s6450_s11 + $0x268] sm:$0xff] }
 0x6e5   : > { %4344 = vmatprep.subr.mxu0 %v3204_v55  ;;  %4387 = vmatprep.subr.mxu1 %v3232_v42 }
 0x6e6   : > { %4345 = vmatpush3.msra.mxu0 %v3188_v7  ;;  %4388 = vmatpush3.msra.mxu1 %v3216_v43 }
 0x6e7   : > { %4346 = vmatprep.subr.mxu0 %v3203_v8  ;;  %4389 = vmatprep.subr.mxu1 %v3231_v44 }
 0x6e8   : > { %4347 = vmatpush3.msra.mxu0 %v3187_v10  ;;  %4390 = vmatpush3.msra.mxu1 %v3215_v45 }
 0x6e9   : > { %4348 = vmatprep.subr.mxu0 %v3202_v11  ;;  %4391 = vmatprep.subr.mxu1 %v3230_v46  ;;  %v3254_v46 = vld [vmem:[%s6450_s11 + $0x260] sm:$0xff] }
 0x6ea   : > { %4349 = vmatpush3.msra.mxu0 %v3186_v12  ;;  %4392 = vmatpush3.msra.mxu1 %v3214_v47 }
 0x6eb   : > { %4350 = vmatprep.subr.mxu0 %v3201_v13  ;;  %4393 = vmatprep.subr.mxu1 %v3229_v48 }
 0x6ec   : > { %4351 = vmatpush3.msra.mxu0 %v3185_v14  ;;  %4394 = vmatpush3.msra.mxu1 %v3213_v49 }
 0x6ed   : > { %4352 = vmatprep.subr.mxu0 %v3200_v15  ;;  %4395 = vmatprep.subr.mxu1 %v3228_v50  ;;  %v3253_v50 = vld [vmem:[%s6450_s11 + $0x258] sm:$0xff] }
 0x6ee   : > { %4353 = vmatpush3.msra.mxu0 %v3184_v53  ;;  %4396 = vmatpush3.msra.mxu1 %v3212_v52 }
 0x6ef   : > { %4354 = vmatprep.subr.mxu0 %v3199_v16  ;;  %4397 = vmatprep.subr.mxu1 %v3227_v54 }
 0x6f0   : > { %4355 = vmatpush3.msra.mxu0 %v3183_v17  ;;  %4398 = vmatpush3.msra.mxu1 %v3211_v56  ;;  %v3252_v56 = vld [vmem:[%s6450_s11 + $0x250] sm:$0xff] }
 0x6f1   : > { %4356 = vmatprep.subr.mxu0 %v3198_v19  ;;  %4399 = vmatprep.subr.mxu1 %v3226_v26 }
 0x6f2   : > { %4357 = vmatpush3.msra.mxu0 %v3182_v21  ;;  %4400 = vmatpush3.msra.mxu1 %v3210_v58 }
 0x6f3   : > { %4358 = vmatprep.subr.mxu0 %v3197_v9  ;;  %4825 = vmatprep.subr.mxu1 %v4996_v25 }
 0x6f4   : > { %4359 = vmatpush3.msra.mxu0 %v3181_v23 }
 0x6f5   : > { %4360 = vmatprep.subr.mxu0 %v3196_v0 }
 0x6f6   : > { %4361 = vmatpush3.msra.mxu0 %v3180_v30  ;;  %v3119_v30 = vld [vmem:[%s6449_s10 + $0x10] sm:$0xff] }
 0x6f7   : > { %4362 = vmatprep.subr.mxu0 %v3195_v27 }
 0x6f8   : > { %4363 = vmatpush3.msra.mxu0 %v3179_v32  ;;  %v3121_v32 = vld [vmem:[%s6449_s10 + $0x20] sm:$0xff] }
 0x6f9   : > { %4364 = vmatprep.subr.mxu0 %v3194_v33  ;;  %v3125_v33 = vld [vmem:[%s6449_s10 + $0x40] sm:$0x3] }
 0x6fa   : > { %4365 = vmatpush3.msra.mxu0 %v3178_v35 }
 0x6fb   : > { %4790 = vmatprep.subr.mxu0 %v4996_v25 }
 0x787   : > { %v2954_v29 = vpop.f32.mrf.mxu0 }
 0x788   : > { %v3127_v5 = vmul.f32 %v3117_v61, %v2954_v29  ;;  %v4789_v21 = vpop.f32.mrf.mxu1 }
 0x789   : > { %v2956_v59 = vpop.f32.mrf.mxu0  ;;  %v3136_v27 = vmul.f32 %v4789_v21, %v3126_v22  ;;  %v3475_v21 = vld [vmem:[%s6452_s13 + $0x28] sm:$0xff]  ;;  %v3472_v22 = vld [vmem:[%s6452_s13 + $0x10] sm:$0xff] }
 0x78a   : > { %v3128_v10 = vmul.f32 %v3118_v4, %v2956_v59  ;;  %v3108_v31 = vpop.f32.mrf.mxu1  ;;  %v3251_v59 = vld [vmem:[%s6450_s11 + $0x248] sm:$0xff] }
 0x78b   : > { %v2960_v62 = vpop.f32.mrf.mxu0  ;;  %v3131_v38 = vmul.f32 %v3121_v32, %v3108_v31  ;;  %v3170_v42 = vsel %vm3137_vm3, %v3136_v27, 0.0  ;;  %v3258_v31 = vld [vmem:[%s6451_s12] sm:$0x1] }
 0x78c   : > { %v3132_v51 = vmul.f32 %v3122_v60, %v2960_v62  ;;  %v3250_v62 = vld [vmem:[%s6450_s11 + $0x240] sm:$0xff] }
 0x78d   : > { %v2962_v55 = vpop.f32.mrf.mxu0  ;;  %v3171_v49 = vadd.f32 %v3170_v42, %v3131_v38  ;;  %v3554_v38 = vld [vmem:[#allocation4] sm:$0xff]  ;;  %v3632_v42 = vld [vmem:[%s6456_s17 + $0x8] sm:$0xff] }
 0x78e   : > { %v3138_v7 = vsel %vm3137_vm3, %v3132_v51, 0.0  ;;  %v3133_v8 = vmul.f32 %v3123_v63, %v2962_v55  ;;  %v3249_v51 = vld [vmem:[%s6450_s11 + $0x238] sm:$0xff] }
 0x78f   : > { %v3139_v11 = vadd.f32 %v3138_v7, %v3127_v5  ;;  %v3172_v29 = vrot.slane %v3171_v49, 4  ;;  %v3248_v7 = vld [vmem:[%s6450_s11 + $0x230] sm:$0xff] }
 0x790   : > { %v3146_v12 = vsel %vm3137_vm3, %v3133_v8, 0.0 }
 0x791   : > { %v3140_v13 = vrot.slane %v3139_v11, 4  ;;  %v3147_v14 = vadd.f32 %v3146_v12, %v3128_v10  ;;  %v3173_v4 = vadd.f32 %v3172_v29, %v3171_v49  ;;  %v3247_v12 = vld [vmem:[%s6450_s11 + $0x228] sm:$0xff] }
 0x793   : > { %v3141_v15 = vadd.f32 %v3140_v13, %v3139_v11  ;;  %v3148_v53 = vrot.slane %v3147_v14, 4  ;;  %v3174_v10 = vrot.slane %v3173_v4, 2  ;;  %v3246_v13 = vld [vmem:[%s6450_s11 + $0x220] sm:$0xff] }
 0x795   : > { %v3142_v16 = vrot.slane %v3141_v15, 2  ;;  %v3149_v57 = vadd.f32 %v3148_v53, %v3147_v14  ;;  %v3175_v14 = vadd.f32 %v3174_v10, %v3173_v4  ;;  %v3244_v53 = vld [vmem:[%s6450_s11 + $0x210] sm:$0xff]  ;;  %v4145_v4 = vld [vmem:[%s6456_s17 + $0x28] sm:$0xff] }
 0x797   : > { %v3143_v17 = vadd.f32 %v3142_v16, %v3141_v15  ;;  %v3150_v18 = vrot.slane %v3149_v57, 2  ;;  %v3245_v15 = vld [vmem:[%s6450_s11 + $0x218] sm:$0xff]  ;;  %v3176_v16 = vrot.slane %v3175_v14, 1 }
 0x799   : > { %v3151_v19 = vadd.f32 %v3150_v18, %v3149_v57  ;;  %v3144_v20 = vrot.slane %v3143_v17, 1  ;;  %v3243_v57 = vld [vmem:[%s6450_s11 + $0x208] sm:$0xff]  ;;  %v3177_v18 = vadd.f32 %v3176_v16, %v3175_v14 }
 0x79b   : > { %v3031_v3 = vpop.f32.mrf.mxu0  ;;  %v3152_v9 = vrot.slane %v3151_v19, 1  ;;  %v3145_v28 = vadd.f32 %v3144_v20, %v3143_v17  ;;  %v3242_v17 = vld [vmem:[%s6450_s11 + $0x200] sm:$0xff]  ;;  %v3476_v20 = vld [vmem:[%s6452_s13 + $0x30] sm:$0xff] }
 0x79c   : > { %v3129_v2 = vmul.f32 %v3119_v30, %v3031_v3  ;;  %v3474_v3 = vld [vmem:[%s6452_s13 + $0x20] sm:$0xff] }
 0x79d   : > { %v3033_v23 = vpop.f32.mrf.mxu0  ;;  %v3153_v0 = vadd.f32 %v3152_v9, %v3151_v19  ;;  %v3477_v19 = vld [vmem:[%s6452_s13 + $0x38] sm:$0xff] }
 0x79e   : > { %v3130_v43 = vmul.f32 %v3120_v34, %v3033_v23  ;;  %v3473_v9 = vld [vmem:[%s6452_s13 + $0x18] sm:$0xff]  ;;  %v3471_v23 = vld [vmem:[%s6452_s13 + $0x8] sm:$0xff] }
 0x79f   : > { %v3037_v6 = vpop.f32.mrf.mxu0  ;;  %3323 = vmatprep.mubr.f32.mxu0 %v3153_v0 }
 0x7a0   : > { %v3134_v35 = vmul.f32 %v3124_v24, %v3037_v6  ;;  %3324 = vmatmul.mubr.f32.vlgmr.msra.gmra.mxu0 %v3145_v28  ;;  %v3470_v24 = vld [vmem:[%s6452_s13] sm:$0xff] }
 0x7a1   : > { %v3039_v37 = vpop.f32.mrf.mxu0  ;;  %4791 = vmatpush3.msra.mxu0 %v3257_v1  ;;  %4822 = vmatprep.mubr.msk.f32.mxu0 %vm4997_vm4, %v4996_v25 }
 0x7a2   : > { %v3154_v39 = vsel %vm3137_vm3, %v3134_v35, 0.0  ;;  %v3135_v40 = vmul.f32 %v3125_v33, %v3039_v37  ;;  %4792 = vmatprep.subr.mxu0 %v4996_v25 }
 0x7a3   : > { %v3155_v44 = vadd.f32 %v3154_v39, %v3129_v2  ;;  %4793 = vmatpush3.msra.mxu0 %v3256_v36  ;;  %v3555_v2 = vld [vmem:[#allocation4 + $0x8] sm:$0xff]  ;;  %v3553_v39 = vld [vmem:[%s641_s29] sm:$0x1] }
 0x7a4   : > { %v3162_v45 = vsel %vm3137_vm3, %v3135_v40, 0.0  ;;  %4794 = vmatprep.subr.mxu0 %v4996_v25  ;;  %v3634_v40 = vld [vmem:[%s6456_s17 + $0x18] sm:$0xff] }
 0x7a5   : > { %v3156_v47 = vrot.slane %v3155_v44, 4  ;;  %v3163_v48 = vadd.f32 %v3162_v45, %v3130_v43  ;;  %4795 = vmatpush3.msra.mxu0 %v3255_v41  ;;  %v3633_v41 = vld [vmem:[%s6456_s17 + $0x10] sm:$0xff]  ;;  %v3631_v43 = vld [vmem:[%s6456_s17] sm:$0xff] }
 0x7a6   : > { %4796 = vmatprep.subr.mxu0 %v4996_v25 }
 0x7a7   : > { %v3157_v52 = vadd.f32 %v3156_v47, %v3155_v44  ;;  %v3164_v54 = vrot.slane %v3163_v48, 4  ;;  %4797 = vmatpush3.msra.mxu0 %v3254_v46  ;;  %v3478_v44 = vld [vmem:[%s6453_s14] sm:$0x1] }
 0x7a8   : > { %4798 = vmatprep.subr.mxu0 %v4996_v25 }
 0x7a9   : > { %v3158_v26 = vrot.slane %v3157_v52, 2  ;;  %v3165_v58 = vadd.f32 %v3164_v54, %v3163_v48  ;;  %4799 = vmatpush3.msra.mxu0 %v3253_v50  ;;  %v3556_v48 = vld [vmem:[%s6455_s16] sm:$0x1] }
 0x7aa   : > { %4800 = vmatprep.subr.mxu0 %v4996_v25 }
 0x7ab   : > { %v3159_v60 = vadd.f32 %v3158_v26, %v3157_v52  ;;  %v3166_v61 = vrot.slane %v3165_v58, 2  ;;  %4801 = vmatpush3.msra.mxu0 %v3252_v56  ;;  %v3713_v56 = vld [vmem:[#allocation4 + $0x18] sm:$0xff]  ;;  %v3712_v26 = vld [vmem:[#allocation4 + $0x10] sm:$0xff] }
 0x7ac   : > { %4802 = vmatprep.subr.mxu0 %v4996_v25 }
 0x7ad   : > { %4803 = vmatpush3.msra.mxu0 %v3251_v59  ;;  %v3167_v63 = vadd.f32 %v3166_v61, %v3165_v58  ;;  %v3160_v5 = vrot.slane %v3159_v60, 1  ;;  %v3635_v58 = vld [vmem:[%s6457_s18] sm:$0x1] }
 0x7ae   : > { %4804 = vmatprep.subr.mxu0 %v4996_v25 }
 0x7af   : > { %4805 = vmatpush3.msra.mxu0 %v3250_v62  ;;  %v3168_v55 = vrot.slane %v3167_v63, 1  ;;  %v3161_v11 = vadd.f32 %v3160_v5, %v3159_v60  ;;  %v4147_v62 = vld [vmem:[%s6456_s17 + $0x38] sm:$0xff]  ;;  %v4142_v5 = vld [vmem:[%s6455_s16 + $0x1] sm:$0x1] }
 0x7b0   : > { %4806 = vmatprep.subr.mxu0 %v4996_v25 }
 0x7b1   : > { %4807 = vmatpush3.msra.mxu0 %v3249_v51  ;;  %v3169_v8 = vadd.f32 %v3168_v55, %v3167_v63  ;;  %v4146_v63 = vld [vmem:[%s6456_s17 + $0x30] sm:$0xff]  ;;  %v4144_v51 = vld [vmem:[%s6456_s17 + $0x20] sm:$0xff] }
 0x7b2   : > { %4808 = vmatprep.subr.mxu0 %v4996_v25 }
 0x7b3   : > { %3393 = vmatprep.mubr.f32.mxu1 %v3169_v8  ;;  %4809 = vmatpush3.msra.mxu0 %v3248_v7 }
 0x7b4   : > { %3394 = vmatmul.mubr.f32.vlgmr.msra.gmra.mxu1 %v3161_v11  ;;  %4810 = vmatprep.subr.mxu0 %v4996_v25  ;;  %v4148_v11 = vld [vmem:[%s6457_s18 + $0x1] sm:$0x1] }
 0x7b5   : > { %4811 = vmatpush3.msra.mxu0 %v3247_v12  ;;  %4841 = vmatprep.mubr.msk.f32.mxu1 %vm4997_vm4, %v4996_v25 }
 0x7b6   : > { %4812 = vmatprep.subr.mxu0 %v4996_v25  ;;  %4826 = vmatpush3.msra.mxu1 %v3477_v19 }
 0x7b7   : > { %4813 = vmatpush3.msra.mxu0 %v3246_v13  ;;  %4827 = vmatprep.subr.mxu1 %v4996_v25 }
 0x7b8   : > { %4814 = vmatprep.subr.mxu0 %v4996_v25  ;;  %4828 = vmatpush3.msra.mxu1 %v3476_v20 }
 0x7b9   : > { %4815 = vmatpush3.msra.mxu0 %v3245_v15  ;;  %4829 = vmatprep.subr.mxu1 %v4996_v25 }
 0x7ba   : > { %4816 = vmatprep.subr.mxu0 %v4996_v25  ;;  %4830 = vmatpush3.msra.mxu1 %v3475_v21 }
 0x7bb   : > { %4817 = vmatpush3.msra.mxu0 %v3244_v53  ;;  %4831 = vmatprep.subr.mxu1 %v4996_v25 }
 0x7bc   : > { %4818 = vmatprep.subr.mxu0 %v4996_v25  ;;  %4832 = vmatpush3.msra.mxu1 %v3474_v3 }
 0x7bd   : > { %4819 = vmatpush3.msra.mxu0 %v3243_v57  ;;  %4833 = vmatprep.subr.mxu1 %v4996_v25 }
 0x7be   : > { %4820 = vmatprep.subr.mxu0 %v4996_v25  ;;  %4834 = vmatpush3.msra.mxu1 %v3473_v9 }
 0x7bf   : > { %4821 = vmatpush3.msra.mxu0 %v3242_v17  ;;  %4835 = vmatprep.subr.mxu1 %v4996_v25 }
 0x7c0   : > { %4823 = vmatmul.mubr.f32.vlgmr.msra.gmra.mxu0 %v3177_v18  ;;  %4869 = vmatprep.subr.mxu0 %v4996_v25 }
 0x7c1   : > { %4877 = vmatprep.mubr.msk.f32.mxu0 %vm4997_vm4, %v4996_v25  ;;  %4836 = vmatpush3.msra.mxu1 %v3472_v22 }
 0x7c2   : > { %4837 = vmatprep.subr.mxu1 %v4996_v25  ;;  %4870 = vmatpush3.msra.mxu0 %v4147_v62 }
 0x7c3   : > { %4838 = vmatpush3.msra.mxu1 %v3471_v23  ;;  %4871 = vmatprep.subr.mxu0 %v4996_v25 }
 0x7c4   : > { %4839 = vmatprep.subr.mxu1 %v4996_v25  ;;  %4872 = vmatpush3.msra.mxu0 %v4146_v63 }
 0x7c5   : > { %4840 = vmatpush3.msra.mxu1 %v3470_v24  ;;  %4873 = vmatprep.subr.mxu0 %v4996_v25 }
 0x7c6   : > { %4844 = vmatprep.subr.mxu1 %v4996_v25  ;;  %4874 = vmatpush3.msra.mxu0 %v4145_v4 }
 0x7c7   : > { %4875 = vmatprep.subr.mxu0 %v4996_v25 }
 0x7c8   : > { %4876 = vmatpush3.msra.mxu0 %v4144_v51 }
 0x860   : > { %v4366_v0 = vpop.f32.mrf.mxu0 }
 0x862   : > { %v4367_v30 = vpop.f32.mrf.mxu0 }
 0x863   : > { %v4368_v27 = vadd.f32 %v4367_v30, %v4366_v0 }
 0x865   : > { %v3326_v6 = vadd.f32 %v4368_v27, %v3258_v31 }
 0x874   : > { %v4401_v28 = vpop.f32.mrf.mxu1 }
 0x876   : > { %v4402_v1 = vpop.f32.mrf.mxu1 }
 0x877   : > { %v4403_v32 = vadd.f32 %v4402_v1, %v4401_v28 }
 0x879   : > { %v3396_v33 = vadd.f32 %v4403_v32, %v3326_v6 }
 0x880   : > { %v3465_v34 = vpop.f32.mrf.mxu0 }
 0x881   : > { %v3466_v35 = vadd.f32 %v3465_v34, %v3396_v33 }
 0x882   : > { %v4824_v36 = vpop.f32.mrf.mxu0 }
 0x883   : > { %4918 = vtanh.f32 %v3466_v35 }
 0x890   : > { %v4919_v37 = vpop.eup %4918 }
 0x891   : > { %4842 = vmatmul.mubr.msk.f32.vlgmr.msra.gmra.mxu1 %vm3479_vm5, %v4919_v37 }
 0x892   : > { %4845 = vmatpush3.msra.mxu1 %v3555_v2  ;;  %4848 = vmatprep.mubr.msk.f32.mxu1 %vm4997_vm4, %v4996_v25 }
 0x893   : > { %4846 = vmatprep.subr.mxu1 %v4996_v25 }
 0x894   : > { %4847 = vmatpush3.msra.mxu1 %v3554_v38 }
 0x895   : > { %4849 = vmatmul.mubr.msk.f32.vlgmr.msra.gmra.mxu1 %vm649_vm0, %v3553_v39  ;;  %4851 = vmatprep.subr.mxu1 %v4996_v25 }
 0x896   : > { %4859 = vmatprep.mubr.msk.f32.mxu1 %vm4997_vm4, %v4996_v25  ;;  %4852 = vmatpush3.msra.mxu1 %v3634_v40 }
 0x897   : > { %4853 = vmatprep.subr.mxu1 %v4996_v25 }
 0x898   : > { %4854 = vmatpush3.msra.mxu1 %v3633_v41 }
 0x899   : > { %4855 = vmatprep.subr.mxu1 %v4996_v25 }
 0x89a   : > { %4856 = vmatpush3.msra.mxu1 %v3632_v42 }
 0x89b   : > { %4857 = vmatprep.subr.mxu1 %v4996_v25 }
 0x89c   : > { %4858 = vmatpush3.msra.mxu1 %v3631_v43 }
 0x89d   : > { %4862 = vmatprep.subr.mxu1 %v4996_v25 }
 0x951   : > { %v3549_v45 = vpop.f32.mrf.mxu1 }
 0x952   : > { %v3550_v46 = vadd.f32 %v3549_v45, %v3478_v44 }
 0x953   : > { %v4843_v47 = vpop.f32.mrf.mxu1 }
 0x954   : > { %3871 = vrot.lane.b32.xlu0 %v3550_v46, %s4998_s20 }
 0x955   : > { %v3626_v49 = vpop.f32.mrf.mxu1 }
 0x956   : > { %v3627_v50 = vadd.f32 %v3626_v49, %v3556_v48 }
 0x957   : > { %v4850_v52 = vpop.f32.mrf.mxu1 }
 0x958   : > { %4920 = vtanh.f32 %v3627_v50 }
 0x965   : > { %v4921_v54 = vpop.eup %4920 }
 0x966   : > { %4860 = vmatmul.mubr.msk.f32.vlgmr.msra.gmra.mxu1 %vm3636_vm6, %v4921_v54 }
 0x967   : > { %4866 = vmatprep.mubr.msk.f32.mxu1 %vm4997_vm4, %v4996_v25  ;;  %4863 = vmatpush3.msra.mxu1 %v3713_v56 }
 0x968   : > { %4864 = vmatprep.subr.mxu1 %v4996_v25 }
 0x969   : > { %4865 = vmatpush3.msra.mxu1 %v3712_v26 }
 0x9c6   : > { %v3872_v25 = vpop.permute.xlu0 %3871 }
 0xa26   : > { %v3706_v29 = vpop.f32.mrf.mxu1 }
 0xa27   : > { %v3707_v59 = vadd.f32 %v3706_v29, %v3635_v58 }
 0xa28   : > { %v4861_v60 = vpop.f32.mrf.mxu1 }
 0xa29   : > { %v3710_v61 = vmul.f32 %v3707_v59, %v3550_v46 }
 0xa2b   : > { %4867 = vmatmul.mubr.msk.f32.vlgmr.msra.gmra.mxu1 %vm649_vm0, %v3710_v61 }
 0xaeb   : > { %v3785_v55 = vpop.f32.mrf.mxu1 }
 0xaec   : > { %v3786_v7 = vadd.f32 %v4142_v5, %v3785_v55 }
 0xaed   : > { %v4868_v8 = vpop.f32.mrf.mxu1 }
 0xaee   : > { %4922 = vtanh.f32 %v3786_v7 }
 0xafb   : > { %v4923_v10 = vpop.eup %4922 }
 0xafc   : > { %4878 = vmatmul.mubr.msk.f32.vlgmr.msra.gmra.mxu0 %vm3636_vm6, %v4923_v10 }
 0xbbc   : > { %v3866_v12 = vpop.f32.mrf.mxu0 }
 0xbbd   : > { %v3867_v13 = vadd.f32 %v4148_v11, %v3866_v12 }
 0xbbe   : > { %v4879_v14 = vpop.f32.mrf.mxu0 }
 0xbbf   : > { %v3874_v15 = vmul.f32 %v3872_v25, %v3867_v13 }
 0xbc1   : > { %v3876_v53 = vsel %vm3875_vm7, %v3874_v15, 0.0 }
 0xbc2   : > { %3877 = vadd.xlane.f32.xlu0 %v3876_v53 }
 0xc4b   : > { %v3878_v16 = vpop.xlane.xlu0 %3877 }
 0xc4c   : > { %3880 = vst.msk [vmem:[%s644_s23] sm:$0x1] %vm3879_vm8, %v3878_v16 }
 0xc4d PF: > { %s31_s0 = sadd.s32 1, %s4990_s0  }
 0xc4e   : > { %p28_p3 = scmp.ge.s32.totalorder %s31_s0, 4  }
 0xc50   :  { %30 = sbr.rel (!%p28_p3) target bundleno = 7 (0x7), region = 152 }
 0xc55   :  { %3898 = vsyncpa [#allocation3], 1 }
 0xc56   :  { %3900 = vsyncpa [#allocation3 + $0x1], 1 }
 0xc57   :  { %3901 = vsyncpa [#allocation5], 1 }

</bundles_post_ra>
